<compile_context>
chip_gen: v7x
topology: tpu7x:2x2x1
jax: 0.10.0
libtpu: 0.0.40
codegen_flags: <defaults>
</compile_context>

<pallas_src>
import jax
import jax.numpy as jnp
from jax.experimental import pallas as pl
from jax.experimental.pallas import tpu as pltpu

# ---------------- configuration (small shapes implied by the forward) --------
BATCH = 2            # batch size
SEQ = 8              # block_size (sequence length)
DMODEL = 32          # dmodel
NUM_HEADS = 4        # num_of_heads
HEAD_DIM = DMODEL // NUM_HEADS
DFF = 4 * DMODEL     # feed-forward hidden dim
EPS = 1e-5           # PyTorch LayerNorm default eps

# rows of the packed parameter block (one (1, width) vector per row)
_R_BQ, _R_BK, _R_BV, _R_BO, _R_B2 = 0, 1, 2, 3, 4
_R_LN1G, _R_LN1B, _R_LN2G, _R_LN2B, _R_B1 = 5, 6, 7, 8, 9
_PBLOCK_ROWS = 16               # padded to a sublane-tile multiple
_PBLOCK_COLS = max(DFF, 128)    # lane-dense parameter block


# ---------------- fused kernel ------------------------------------------------
def _layernorm(y, gamma, beta):
    mean = jnp.mean(y, axis=-1, keepdims=True)
    var = jnp.mean((y - mean) ** 2, axis=-1, keepdims=True)
    return (y - mean) * jax.lax.rsqrt(var + EPS) * gamma + beta


def encoder_kernel(x_ref, wq_ref, wk_ref, wv_ref, wo_ref, w1_ref, w2_ref,
                   p_ref, o_ref):
    """Whole encoder block, whole batch, single kernel invocation (no grid).

    x_ref / o_ref : (B*S, D) flat activation slab resident in VMEM.
    p_ref         : (16, 128) packed bias / LayerNorm parameter block.
    """
    x = x_ref[...]                                                  # (B*S, D)

    def row(i, width=DMODEL):                                       # (1, width)
        return p_ref[i:i + 1, :width]

    # ---- Q / K / V projections (separate matmuls -> no lane slicing) --------
    q = jnp.dot(x, wq_ref[...], preferred_element_type=jnp.float32) + row(_R_BQ)
    k = jnp.dot(x, wk_ref[...], preferred_element_type=jnp.float32) + row(_R_BK)
    v = jnp.dot(x, wv_ref[...], preferred_element_type=jnp.float32) + row(_R_BV)

    # ---- one layout change per tensor: (B*S, D) -> (B*H, S, HEAD_DIM) -------
    def split_heads(t):
        t4 = t.reshape(BATCH, SEQ, NUM_HEADS, HEAD_DIM)
        t4 = jnp.transpose(t4, (0, 2, 1, 3))                        # (B,H,S,hd)
        return t4.reshape(BATCH * NUM_HEADS, SEQ, HEAD_DIM)

    qh, kh, vh = split_heads(q), split_heads(k), split_heads(v)

    # ---- all heads at once: two batched einsums + one softmax ---------------
    scale = 1.0 / (HEAD_DIM ** 0.5)
    s = jnp.einsum("bqd,bkd->bqk", qh, kh,
                   preferred_element_type=jnp.float32) * scale      # (B*H,S,S)
    s = s - jnp.max(s, axis=-1, keepdims=True)
    p = jnp.exp(s)
    p = p / jnp.sum(p, axis=-1, keepdims=True)                      # exact softmax
    ctx = jnp.einsum("bqk,bkd->bqd", p, vh,
                     preferred_element_type=jnp.float32)            # (B*H,S,hd)

    # ---- merge heads back and apply ONE full output projection --------------
    ctx = ctx.reshape(BATCH, NUM_HEADS, SEQ, HEAD_DIM)
    ctx = jnp.transpose(ctx, (0, 2, 1, 3)).reshape(BATCH * SEQ, DMODEL)
    attn = jnp.dot(ctx, wo_ref[...],
                   preferred_element_type=jnp.float32) + row(_R_BO)

    # ---- residual + LayerNorm 1 (post-norm) ---------------------------------
    y1 = _layernorm(x + attn, row(_R_LN1G), row(_R_LN1B))

    # ---- feed-forward: Linear -> ReLU -> Linear -----------------------------
    h = jnp.maximum(
        jnp.dot(y1, w1_ref[...], preferred_element_type=jnp.float32)
        + row(_R_B1, DFF), 0.0)                                      # (B*S, DFF)
    y2 = jnp.dot(h, w2_ref[...],
                 preferred_element_type=jnp.float32) + row(_R_B2)    # (B*S, D)

    # ---- residual + LayerNorm 2 ---------------------------------------------
    o_ref[...] = _layernorm(y1 + y2, row(_R_LN2G), row(_R_LN2B)).astype(o_ref.dtype)


# ---------------- wrapper -----------------------------------------------------
def _pack_params(params, D):
    """Pack all (1, N) bias / LayerNorm vectors into one (16, 128) f32 block."""
    blk = jnp.zeros((_PBLOCK_ROWS, _PBLOCK_COLS), jnp.float32)
    small = [
        (_R_BQ, params["bq"]), (_R_BK, params["bk"]), (_R_BV, params["bv"]),
        (_R_BO, params["bo"]), (_R_B2, params["b2"]),
        (_R_LN1G, params["ln1_g"]), (_R_LN1B, params["ln1_b"]),
        (_R_LN2G, params["ln2_g"]), (_R_LN2B, params["ln2_b"]),
    ]
    for r, vec in small:
        blk = blk.at[r, :D].set(vec[0])
    blk = blk.at[_R_B1, :DFF].set(params["b1"][0])
    return blk


def encoder_forward(x, params):
    B, S, D = x.shape
    x2 = x.reshape(B * S, D)                   # free wrapper-side flatten
    pblk = _pack_params(params, D)

    vmem_spec = lambda: pl.BlockSpec(memory_space=pltpu.MemorySpace.VMEM)

    out2 = pl.pallas_call(
        encoder_kernel,
        out_shape=jax.ShapeDtypeStruct((B * S, D), x.dtype),
        in_specs=[vmem_spec() for _ in range(8)],     # whole arrays, no grid
        out_specs=vmem_spec(),
    )(x2, params["wq"], params["wk"], params["wv"], params["wo"],
      params["w1"], params["w2"], pblk)

    return out2.reshape(B, S, D)


# ---------------- reference (plain JAX) for sanity check ----------------------
def encoder_reference(x, p):
    def layernorm(y, g, b):
        m = jnp.mean(y, -1, keepdims=True)
        v = jnp.mean((y - m) ** 2, -1, keepdims=True)
        return (y - m) * jax.lax.rsqrt(v + EPS) * g + b

    q = x @ p["wq"] + p["bq"][0]
    k = x @ p["wk"] + p["bk"][0]
    v = x @ p["wv"] + p["bv"][0]
    B, S, _ = x.shape
    qh = q.reshape(B, S, NUM_HEADS, HEAD_DIM).transpose(0, 2, 1, 3)
    kh = k.reshape(B, S, NUM_HEADS, HEAD_DIM).transpose(0, 2, 1, 3)
    vh = v.reshape(B, S, NUM_HEADS, HEAD_DIM).transpose(0, 2, 1, 3)
    s = jnp.einsum("bhqd,bhkd->bhqk", qh, kh) / (HEAD_DIM ** 0.5)
    a = jax.nn.softmax(s, axis=-1)
    o = jnp.einsum("bhqk,bhkd->bhqd", a, vh).transpose(0, 2, 1, 3).reshape(B, S, DMODEL)
    o = o @ p["wo"] + p["bo"][0]
    x1 = layernorm(x + o, p["ln1_g"][0], p["ln1_b"][0])

    h = jnp.maximum(x1 @ p["w1"] + p["b1"][0], 0.0)
    y = h @ p["w2"] + p["b2"][0]
    return layernorm(x1 + y, p["ln2_g"][0], p["ln2_b"][0])


# ---------------- parameter init ----------------------------------------------
def init_params(key):
    ks = jax.random.split(key, 16)
    std = 0.02
    p = {
        "wq": jax.random.normal(ks[0], (DMODEL, DMODEL), jnp.float32) * std,
        "wk": jax.random.normal(ks[1], (DMODEL, DMODEL), jnp.float32) * std,
        "wv": jax.random.normal(ks[2], (DMODEL, DMODEL), jnp.float32) * std,
        "wo": jax.random.normal(ks[3], (DMODEL, DMODEL), jnp.float32) * std,
        "w1": jax.random.normal(ks[4], (DMODEL, DFF), jnp.float32) * std,
        "w2": jax.random.normal(ks[5], (DFF, DMODEL), jnp.float32) * std,
        # non-zero biases / LN params so the packed-parameter path is exercised
        "bq": jax.random.normal(ks[6], (1, DMODEL), jnp.float32) * std,
        "bk": jax.random.normal(ks[7], (1, DMODEL), jnp.float32) * std,
        "bv": jax.random.normal(ks[8], (1, DMODEL), jnp.float32) * std,
        "bo": jax.random.normal(ks[9], (1, DMODEL), jnp.float32) * std,
        "b1": jax.random.normal(ks[10], (1, DFF), jnp.float32) * std,
        "b2": jax.random.normal(ks[11], (1, DMODEL), jnp.float32) * std,
        "ln1_g": 1.0 + jax.random.normal(ks[12], (1, DMODEL), jnp.float32) * 0.05,
        "ln1_b": jax.random.normal(ks[13], (1, DMODEL), jnp.float32) * 0.05,
        "ln2_g": 1.0 + jax.random.normal(ks[14], (1, DMODEL), jnp.float32) * 0.05,
        "ln2_b": jax.random.normal(ks[15], (1, DMODEL), jnp.float32) * 0.05,
    }
    return p


if __name__ == "__main__":
    key = jax.random.PRNGKey(0)
    k_x, k_p = jax.random.split(key)
    x = jax.random.normal(k_x, (BATCH, SEQ, DMODEL), jnp.float32)
    params = init_params(k_p)

    out = jax.jit(encoder_forward)(x, params)
    out = jax.block_until_ready(out)

    ref = encoder_reference(x, params)
    assert out.shape == (BATCH, SEQ, DMODEL)
    assert jnp.allclose(out, ref, atol=1e-4, rtol=1e-4), "mismatch vs reference"

    # TODO(synk): dropout (train-mode) omitted — eval-mode forward is identity.
    print("KERNEL_OK")
</pallas_src>

<mosaic_0001>
module attributes {stable_mosaic.version = 11 : i64} {
  func.func @encoder_kernel(%arg0: memref<16x32xf32, #tpu.memory_space<vmem>>, %arg1: memref<32x32xf32, #tpu.memory_space<vmem>>, %arg2: memref<32x32xf32, #tpu.memory_space<vmem>>, %arg3: memref<32x32xf32, #tpu.memory_space<vmem>>, %arg4: memref<32x32xf32, #tpu.memory_space<vmem>>, %arg5: memref<32x128xf32, #tpu.memory_space<vmem>>, %arg6: memref<128x32xf32, #tpu.memory_space<vmem>>, %arg7: memref<16x128xf32, #tpu.memory_space<vmem>>, %arg8: memref<16x32xf32, #tpu.memory_space<vmem>>) attributes {dimension_semantics = [], scalar_prefetch = 0 : i64, scratch_operands = 0 : i64, tpu.core_type = #tpu.core_type<tc>} {
    %c0 = arith.constant 0 : index
    %c0_0 = arith.constant 0 : index
    %0 = vector.load %arg0[%c0, %c0_0] : memref<16x32xf32, #tpu.memory_space<vmem>>, vector<16x32xf32>
    %c0_1 = arith.constant 0 : index
    %c0_2 = arith.constant 0 : index
    %1 = vector.load %arg1[%c0_1, %c0_2] : memref<32x32xf32, #tpu.memory_space<vmem>>, vector<32x32xf32>
    %cst = arith.constant dense<0.000000e+00> : vector<16x32xf32>
    %2 = tpu.matmul %0, %1, %cst {dimension_numbers = #tpu.dot_dimension_numbers<[1], [0], [0], [1], [0, 0, 1, 1], [], []>} : vector<16x32xf32>, vector<32x32xf32>, vector<16x32xf32> -> vector<16x32xf32>
    %c0_3 = arith.constant 0 : index
    %c0_4 = arith.constant 0 : index
    %3 = vector.load %arg7[%c0_3, %c0_4] : memref<16x128xf32, #tpu.memory_space<vmem>>, vector<1x32xf32>
    %4 = vector.broadcast %3 : vector<1x32xf32> to vector<16x32xf32>
    %5 = arith.addf %2, %4 : vector<16x32xf32>
    %c0_5 = arith.constant 0 : index
    %c0_6 = arith.constant 0 : index
    %6 = vector.load %arg2[%c0_5, %c0_6] : memref<32x32xf32, #tpu.memory_space<vmem>>, vector<32x32xf32>
    %cst_7 = arith.constant dense<0.000000e+00> : vector<16x32xf32>
    %7 = tpu.matmul %0, %6, %cst_7 {dimension_numbers = #tpu.dot_dimension_numbers<[1], [0], [0], [1], [0, 0, 1, 1], [], []>} : vector<16x32xf32>, vector<32x32xf32>, vector<16x32xf32> -> vector<16x32xf32>
    %c1 = arith.constant 1 : index
    %c0_8 = arith.constant 0 : index
    %8 = vector.load %arg7[%c1, %c0_8] : memref<16x128xf32, #tpu.memory_space<vmem>>, vector<1x32xf32>
    %9 = vector.broadcast %8 : vector<1x32xf32> to vector<16x32xf32>
    %10 = arith.addf %7, %9 : vector<16x32xf32>
    %c0_9 = arith.constant 0 : index
    %c0_10 = arith.constant 0 : index
    %11 = vector.load %arg3[%c0_9, %c0_10] : memref<32x32xf32, #tpu.memory_space<vmem>>, vector<32x32xf32>
    %cst_11 = arith.constant dense<0.000000e+00> : vector<16x32xf32>
    %12 = tpu.matmul %0, %11, %cst_11 {dimension_numbers = #tpu.dot_dimension_numbers<[1], [0], [0], [1], [0, 0, 1, 1], [], []>} : vector<16x32xf32>, vector<32x32xf32>, vector<16x32xf32> -> vector<16x32xf32>
    %c2 = arith.constant 2 : index
    %c0_12 = arith.constant 0 : index
    %13 = vector.load %arg7[%c2, %c0_12] : memref<16x128xf32, #tpu.memory_space<vmem>>, vector<1x32xf32>
    %14 = vector.broadcast %13 : vector<1x32xf32> to vector<16x32xf32>
    %15 = arith.addf %12, %14 : vector<16x32xf32>
    %16 = vector.shape_cast %5 : vector<16x32xf32> to vector<2x8x4x8xf32>
    %17 = tpu.transpose %16, [0, 2, 1, 3] : vector<2x8x4x8xf32> -> vector<2x4x8x8xf32>
    %18 = vector.shape_cast %17 : vector<2x4x8x8xf32> to vector<8x8x8xf32>
    %19 = vector.shape_cast %10 : vector<16x32xf32> to vector<2x8x4x8xf32>
    %20 = tpu.transpose %19, [0, 2, 1, 3] : vector<2x8x4x8xf32> -> vector<2x4x8x8xf32>
    %21 = vector.shape_cast %20 : vector<2x4x8x8xf32> to vector<8x8x8xf32>
    %22 = vector.shape_cast %15 : vector<16x32xf32> to vector<2x8x4x8xf32>
    %23 = tpu.transpose %22, [0, 2, 1, 3] : vector<2x8x4x8xf32> -> vector<2x4x8x8xf32>
    %24 = vector.shape_cast %23 : vector<2x4x8x8xf32> to vector<8x8x8xf32>
    "tpu.trace_start"() <{level = 10 : i32, message = "bqd,bkd->bqk"}> : () -> ()
    %cst_13 = arith.constant dense<0.000000e+00> : vector<8x8x8xf32>
    %25 = tpu.matmul %18, %21, %cst_13 {dimension_numbers = #tpu.dot_dimension_numbers<[2], [2], [1], [1], [0, 0, 0, 1, 1, 1], [0], [0]>} : vector<8x8x8xf32>, vector<8x8x8xf32>, vector<8x8x8xf32> -> vector<8x8x8xf32>
    "tpu.trace_stop"() : () -> ()
    %cst_14 = arith.constant 0.353553385 : f32
    %26 = vector.broadcast %cst_14 : f32 to vector<8x8x8xf32>
    %27 = arith.mulf %25, %26 : vector<8x8x8xf32>
    %cst_15 = arith.constant dense<0xFF800000> : vector<8x8xf32>
    %28 = vector.multi_reduction <maximumf>, %27, %cst_15 [2] : vector<8x8x8xf32> to vector<8x8xf32>
    %29 = vector.shape_cast %28 : vector<8x8xf32> to vector<8x8x1xf32>
    %30 = vector.broadcast %29 : vector<8x8x1xf32> to vector<8x8x8xf32>
    %31 = arith.subf %27, %30 : vector<8x8x8xf32>
    %32 = math.exp %31 : vector<8x8x8xf32>
    %cst_16 = arith.constant dense<0.000000e+00> : vector<8x8xf32>
    %33 = vector.multi_reduction <add>, %32, %cst_16 [2] : vector<8x8x8xf32> to vector<8x8xf32>
    %34 = vector.shape_cast %33 : vector<8x8xf32> to vector<8x8x1xf32>
    %35 = vector.broadcast %34 : vector<8x8x1xf32> to vector<8x8x8xf32>
    %36 = arith.divf %32, %35 : vector<8x8x8xf32>
    "tpu.trace_start"() <{level = 10 : i32, message = "bqk,bkd->bqd"}> : () -> ()
    %cst_17 = arith.constant dense<0.000000e+00> : vector<8x8x8xf32>
    %37 = tpu.matmul %36, %24, %cst_17 {dimension_numbers = #tpu.dot_dimension_numbers<[2], [1], [1], [2], [0, 0, 0, 1, 1, 2], [0], [0]>} : vector<8x8x8xf32>, vector<8x8x8xf32>, vector<8x8x8xf32> -> vector<8x8x8xf32>
    "tpu.trace_stop"() : () -> ()
    %38 = vector.shape_cast %37 : vector<8x8x8xf32> to vector<2x4x8x8xf32>
    %39 = tpu.transpose %38, [0, 2, 1, 3] : vector<2x4x8x8xf32> -> vector<2x8x4x8xf32>
    %40 = vector.shape_cast %39 : vector<2x8x4x8xf32> to vector<16x32xf32>
    %c0_18 = arith.constant 0 : index
    %c0_19 = arith.constant 0 : index
    %41 = vector.load %arg4[%c0_18, %c0_19] : memref<32x32xf32, #tpu.memory_space<vmem>>, vector<32x32xf32>
    %cst_20 = arith.constant dense<0.000000e+00> : vector<16x32xf32>
    %42 = tpu.matmul %40, %41, %cst_20 {dimension_numbers = #tpu.dot_dimension_numbers<[1], [0], [0], [1], [0, 0, 1, 1], [], []>} : vector<16x32xf32>, vector<32x32xf32>, vector<16x32xf32> -> vector<16x32xf32>
    %c3 = arith.constant 3 : index
    %c0_21 = arith.constant 0 : index
    %43 = vector.load %arg7[%c3, %c0_21] : memref<16x128xf32, #tpu.memory_space<vmem>>, vector<1x32xf32>
    %44 = vector.broadcast %43 : vector<1x32xf32> to vector<16x32xf32>
    %45 = arith.addf %42, %44 : vector<16x32xf32>
    %46 = arith.addf %0, %45 : vector<16x32xf32>
    %c5 = arith.constant 5 : index
    %c0_22 = arith.constant 0 : index
    %47 = vector.load %arg7[%c5, %c0_22] : memref<16x128xf32, #tpu.memory_space<vmem>>, vector<1x32xf32>
    %c6 = arith.constant 6 : index
    %c0_23 = arith.constant 0 : index
    %48 = vector.load %arg7[%c6, %c0_23] : memref<16x128xf32, #tpu.memory_space<vmem>>, vector<1x32xf32>
    %cst_24 = arith.constant dense<0.000000e+00> : vector<16xf32>
    %49 = vector.multi_reduction <add>, %46, %cst_24 [1] : vector<16x32xf32> to vector<16xf32>
    %50 = vector.shape_cast %49 : vector<16xf32> to vector<16x1xf32>
    %cst_25 = arith.constant 3.200000e+01 : f32
    %51 = vector.broadcast %cst_25 : f32 to vector<16x1xf32>
    %52 = arith.divf %50, %51 : vector<16x1xf32>
    %53 = vector.broadcast %52 : vector<16x1xf32> to vector<16x32xf32>
    %54 = arith.subf %46, %53 : vector<16x32xf32>
    %55 = arith.mulf %54, %54 : vector<16x32xf32>
    %cst_26 = arith.constant dense<0.000000e+00> : vector<16xf32>
    %56 = vector.multi_reduction <add>, %55, %cst_26 [1] : vector<16x32xf32> to vector<16xf32>
    %57 = vector.shape_cast %56 : vector<16xf32> to vector<16x1xf32>
    %cst_27 = arith.constant 3.200000e+01 : f32
    %58 = vector.broadcast %cst_27 : f32 to vector<16x1xf32>
    %59 = arith.divf %57, %58 : vector<16x1xf32>
    %60 = vector.broadcast %52 : vector<16x1xf32> to vector<16x32xf32>
    %61 = arith.subf %46, %60 : vector<16x32xf32>
    %cst_28 = arith.constant 9.99999974E-6 : f32
    %62 = vector.broadcast %cst_28 : f32 to vector<16x1xf32>
    %63 = arith.addf %59, %62 : vector<16x1xf32>
    %64 = math.rsqrt %63 : vector<16x1xf32>
    %65 = vector.broadcast %64 : vector<16x1xf32> to vector<16x32xf32>
    %66 = arith.mulf %61, %65 : vector<16x32xf32>
    %67 = vector.broadcast %47 : vector<1x32xf32> to vector<16x32xf32>
    %68 = arith.mulf %66, %67 : vector<16x32xf32>
    %69 = vector.broadcast %48 : vector<1x32xf32> to vector<16x32xf32>
    %70 = arith.addf %68, %69 : vector<16x32xf32>
    %c0_29 = arith.constant 0 : index
    %c0_30 = arith.constant 0 : index
    %71 = vector.load %arg5[%c0_29, %c0_30] : memref<32x128xf32, #tpu.memory_space<vmem>>, vector<32x128xf32>
    %cst_31 = arith.constant dense<0.000000e+00> : vector<16x128xf32>
    %72 = tpu.matmul %70, %71, %cst_31 {dimension_numbers = #tpu.dot_dimension_numbers<[1], [0], [0], [1], [0, 0, 1, 1], [], []>} : vector<16x32xf32>, vector<32x128xf32>, vector<16x128xf32> -> vector<16x128xf32>
    %c9 = arith.constant 9 : index
    %c0_32 = arith.constant 0 : index
    %73 = vector.load %arg7[%c9, %c0_32] : memref<16x128xf32, #tpu.memory_space<vmem>>, vector<1x128xf32>
    %74 = vector.broadcast %73 : vector<1x128xf32> to vector<16x128xf32>
    %75 = arith.addf %72, %74 : vector<16x128xf32>
    %cst_33 = arith.constant 0.000000e+00 : f32
    %76 = vector.broadcast %cst_33 : f32 to vector<16x128xf32>
    %77 = arith.maximumf %75, %76 : vector<16x128xf32>
    %c0_34 = arith.constant 0 : index
    %c0_35 = arith.constant 0 : index
    %78 = vector.load %arg6[%c0_34, %c0_35] : memref<128x32xf32, #tpu.memory_space<vmem>>, vector<128x32xf32>
    %cst_36 = arith.constant dense<0.000000e+00> : vector<16x32xf32>
    %79 = tpu.matmul %77, %78, %cst_36 {dimension_numbers = #tpu.dot_dimension_numbers<[1], [0], [0], [1], [0, 0, 1, 1], [], []>} : vector<16x128xf32>, vector<128x32xf32>, vector<16x32xf32> -> vector<16x32xf32>
    %c4 = arith.constant 4 : index
    %c0_37 = arith.constant 0 : index
    %80 = vector.load %arg7[%c4, %c0_37] : memref<16x128xf32, #tpu.memory_space<vmem>>, vector<1x32xf32>
    %81 = vector.broadcast %80 : vector<1x32xf32> to vector<16x32xf32>
    %82 = arith.addf %79, %81 : vector<16x32xf32>
    %83 = arith.addf %70, %82 : vector<16x32xf32>
    %c7 = arith.constant 7 : index
    %c0_38 = arith.constant 0 : index
    %84 = vector.load %arg7[%c7, %c0_38] : memref<16x128xf32, #tpu.memory_space<vmem>>, vector<1x32xf32>
    %c8 = arith.constant 8 : index
    %c0_39 = arith.constant 0 : index
    %85 = vector.load %arg7[%c8, %c0_39] : memref<16x128xf32, #tpu.memory_space<vmem>>, vector<1x32xf32>
    %cst_40 = arith.constant dense<0.000000e+00> : vector<16xf32>
    %86 = vector.multi_reduction <add>, %83, %cst_40 [1] : vector<16x32xf32> to vector<16xf32>
    %87 = vector.shape_cast %86 : vector<16xf32> to vector<16x1xf32>
    %cst_41 = arith.constant 3.200000e+01 : f32
    %88 = vector.broadcast %cst_41 : f32 to vector<16x1xf32>
    %89 = arith.divf %87, %88 : vector<16x1xf32>
    %90 = vector.broadcast %89 : vector<16x1xf32> to vector<16x32xf32>
    %91 = arith.subf %83, %90 : vector<16x32xf32>
    %92 = arith.mulf %91, %91 : vector<16x32xf32>
    %cst_42 = arith.constant dense<0.000000e+00> : vector<16xf32>
    %93 = vector.multi_reduction <add>, %92, %cst_42 [1] : vector<16x32xf32> to vector<16xf32>
    %94 = vector.shape_cast %93 : vector<16xf32> to vector<16x1xf32>
    %cst_43 = arith.constant 3.200000e+01 : f32
    %95 = vector.broadcast %cst_43 : f32 to vector<16x1xf32>
    %96 = arith.divf %94, %95 : vector<16x1xf32>
    %97 = vector.broadcast %89 : vector<16x1xf32> to vector<16x32xf32>
    %98 = arith.subf %83, %97 : vector<16x32xf32>
    %cst_44 = arith.constant 9.99999974E-6 : f32
    %99 = vector.broadcast %cst_44 : f32 to vector<16x1xf32>
    %100 = arith.addf %96, %99 : vector<16x1xf32>
    %101 = math.rsqrt %100 : vector<16x1xf32>
    %102 = vector.broadcast %101 : vector<16x1xf32> to vector<16x32xf32>
    %103 = arith.mulf %98, %102 : vector<16x32xf32>
    %104 = vector.broadcast %84 : vector<1x32xf32> to vector<16x32xf32>
    %105 = arith.mulf %103, %104 : vector<16x32xf32>
    %106 = vector.broadcast %85 : vector<1x32xf32> to vector<16x32xf32>
    %107 = arith.addf %105, %106 : vector<16x32xf32>
    %c0_45 = arith.constant 0 : index
    %c0_46 = arith.constant 0 : index
    %108 = vector.load %arg8[%c0_45, %c0_46] : memref<16x32xf32, #tpu.memory_space<vmem>>, vector<16x32xf32>
    tpu.vector_store %arg8[%c0_45, %c0_46], %107 {strides = array<i32>} : memref<16x32xf32, #tpu.memory_space<vmem>>, vector<16x32xf32>,
    return
  }
}

</mosaic_0001>

<bundles_post_ra>
// kernel: encoder_forward.1
= control target key start
LH: loop header
LB: loop body
LE: loop exit
PB: predicated region body
PF: predicated region fallthrough
CT: control target
= control target key end

     0   :  { %vm41_vm0 = vcmask 261120   ;;  %s4209_s0 = inlined_call_operand.vmem [shape: f32[16,32], index: 0, kind: input, shape index: {}]   ;;  %s4210_s1 = inlined_call_operand.vmem [shape: f32[32,32], index: 1, kind: input, shape index: {}]   ;;  %s4211_s2 = inlined_call_operand.vmem [shape: f32[32,32], index: 2, kind: input, shape index: {}]   ;;  %s4212_s3 = inlined_call_operand.vmem [shape: f32[32,32], index: 3, kind: input, shape index: {}]   ;;  %s4213_s4 = inlined_call_operand.vmem [shape: f32[32,32], index: 4, kind: input, shape index: {}]   ;;  %s4214_s5 = inlined_call_operand.vmem [shape: f32[32,128], index: 5, kind: input, shape index: {}]   ;;  %s4215_s6 = inlined_call_operand.vmem [shape: f32[128,32], index: 6, kind: input, shape index: {}]   ;;  %s4216_s7 = inlined_call_operand.vmem [shape: f32[16,128], index: 7, kind: input, shape index: {}]   ;;  %s4217_s8 = inlined_call_operand.hbm [shape: f32[16,32], index: 8, kind: output, shape index: {}]  }
   0x1   :  { %v32_v0 = vld [vmem:[%s4210_s1] sm:$0xff]  ;;  %v33_v1 = vld [vmem:[%s4210_s1 + $0x8] sm:$0xff]  ;;  %v34_v2 = vld [vmem:[%s4210_s1 + $0x10] sm:$0xff] }
   0x2   :  { %v3451_v3 = vpack.c.bf16 %v33_v1, %v32_v0  ;;  %v35_v4 = vld [vmem:[%s4210_s1 + $0x18] sm:$0xff]  ;;  %v30_v5 = vld [vmem:[%s4209_s0] sm:$0xff]  ;;  %v124_v8 = vld [vmem:[%s4211_s2 + $0x8] sm:$0xff] }
   0x3   :  { %v3455_v6 = vpack.c.bf16 %v35_v4, %v34_v2  ;;  %3289 = vmatprep.mubr.msk.f32.mxu1 %vm41_vm0, %v30_v5  ;;  %v123_v7 = vld [vmem:[%s4211_s2] sm:$0xff] }
   0x4   :  { %3452 = vmatprep.subr.bf16.mxu1 %v3451_v3 }
   0x5   :  { %13 = vsyncpa [#allocation3], 0  ;;  %3454 = vmatpush3.bf16.msra.mxu1 %v3451_v3  ;;  %v3459_v9 = vpack.c.bf16 %v124_v8, %v123_v7  ;;  %v125_v10 = vld [vmem:[%s4211_s2 + $0x10] sm:$0xff]  ;;  %v126_v11 = vld [vmem:[%s4211_s2 + $0x18] sm:$0xff]  ;;  %s3601_s11 = smov 120   ;;  %s3602_s13 = smov 104   ;;  %v316_v33 = vlaneseq }
   0x6   :  { %3456 = vmatprep.subr.bf16.mxu1 %v3455_v6  ;;  %v31_v12 = vld [vmem:[%s4209_s0 + $0x8] sm:$0xff]  ;;  %v3463_v13 = vpack.c.bf16 %v126_v11, %v125_v10  ;;  %v207_v14 = vld [vmem:[%s4212_s3] sm:$0xff]  ;;  %v209_v16 = vld [vmem:[%s4212_s3 + $0x10] sm:$0xff]  ;;  %s3603_s14 = smov 112   ;;  %v3604_v30 = vmov 0.0   ;;  %vm3605_vm1 = vmmov 0  }
   0x7   :  { %v208_v15 = vld [vmem:[%s4212_s3 + $0x8] sm:$0xff]  ;;  %v210_v18 = vld [vmem:[%s4212_s3 + $0x18] sm:$0xff]  ;;  %v3141_v20 = vld [vmem:[%s4216_s7] ss:$0 sm:$0xff]  ;;  %3324 = vmatprep.subr.mxu0 %v3604_v30  ;;  %3326 = vmatprep.mubr.msk.f32.mxu0 %vm3605_vm1, %v3604_v30  ;;  %v3606_v31 = vmov 1983009808  }
   0x8   :  { %v3467_v17 = vpack.c.bf16 %v208_v15, %v207_v14  ;;  %v3471_v19 = vpack.c.bf16 %v210_v18, %v209_v16  ;;  %v3144_v24 = vld [vmem:[%s4216_s7 + $0x1] ss:$0 sm:$0xff]  ;;  %v314_v32 = vunpack.c.l.s4 %v3606_v31  ;;  %v3607_v35 = vmov 1934713408   ;;  %v3147_v41 = vld [vmem:[%s4216_s7 + $0x2] ss:$0 sm:$0xff] }
   0x9   :  { %3458 = vmatpush3.bf16.msra.mxu1 %v3455_v6  ;;  %v346_v36 = vunpack.c.l.s4 %v3607_v35  ;;  %v317_v38 = vshrl.u32 %v316_v33, 7  ;;  %vm1167_vm2 = vcmask 64512   ;;  %s3608_s17 = smov 8   ;;  %s3609_s18 = smov 16   ;;  %vm2754_vm3 = vcmask 130048  }
   0xa   :  { %3460 = vmatprep.subr.bf16.mxu1 %v3459_v9  ;;  %v315_v37 = vunpack.c.0.s8 %v314_v32  ;;  %s3610_s1 = smov 24   ;;  %vm2757_vm4 = vcmask 195584   ;;  %s3611_s28 = smov [#allocation2]  }
   0xb   :  { %v347_v43 = vunpack.c.0.s8 %v346_v36  ;;  %s3130_s29 = sshll.u32 %s3611_s28, 4  ;;  %s3131_s29 = int_to_ptr.vmem [resolvable:$true] %s3130_s29 }
   0xc   :  { %3290 = vmatmul.mubr.msk.f32.vlgmr.msra.gmra.mrb[0].mxu1 %vm41_vm0, %v31_v12  ;;  %v3750_v46 = vsub.s32 %v315_v37, %v317_v38  ;;  %s3577_s30 = scalar_lea.vmem %s3131_s29, 256  ;;  %p3582_p1 = scmp.lt.s32.totalorder %s3131_s29, %s3131_s29 }
   0xd   :  { %3462 = vmatpush3.bf16.msra.mxu1 %v3459_v9  ;;  %3300 = vmatprep.mubr.msk.f32.mxu1 %vm41_vm0, %v30_v5  ;;  %v3756_v56 = vsub.s32 %v347_v43, %v317_v38  ;;  %p3578_p0 = scmp.ne.s32.totalorder %s3131_s29, %s3577_s30  ;;  %p3583_p2 = scmp.lt.s32.totalorder %s3577_s30, %s3577_s30 }
   0xe   :  { %3464 = vmatprep.subr.bf16.mxu1 %v3463_v13 }
   0xf   :  { %p3584_p3 = por %p3583_p2, %p3582_p1 }
  0x11   :  { %3466 = vmatpush3.bf16.msra.mxu1 %v3463_v13  ;;  %p3585_p4 = pnand %p3584_p3, %p3578_p0 }
  0x12   :  { %3468 = vmatprep.subr.bf16.mxu1 %v3467_v17 }
  0x14   :  { %3301 = vmatmul.mubr.msk.f32.vlgmr.msra.gmra.mrb[2].mxu1 %vm41_vm0, %v31_v12 }
  0x15   :  { %3311 = vmatprep.mubr.msk.f32.mxu1 %vm41_vm0, %v30_v5  ;;  %3470 = vmatpush3.bf16.msra.mxu1 %v3467_v17 }
  0x16   :  { %3472 = vmatprep.subr.bf16.mxu1 %v3471_v19 }
  0x19   :  { %3474 = vmatpush3.bf16.msra.mxu1 %v3471_v19 }
  0x1a   :  { %3314 = vmatprep.subr.mxu1 %v3604_v30 }
  0x1c   :  { %3312 = vmatmul.mubr.msk.f32.vlgmr.msra.gmra.mrb[4].mxu1 %vm41_vm0, %v31_v12 }
  0x1d   :  { %3316 = vmatprep.mubr.msk.f32.mxu1 %vm3605_vm1, %v3604_v30 }
  0xdf   :  { %v3291_v21 = vpop.f32.mrb[0].mxu1 }
  0xe0   :  { %v114_v22 = vpop.f32.mrb[1].mxu1  ;;  %v3727_v29 = vadd.f32 %v3291_v21, %v3141_v20 }
  0xe1   :  { %v3709_v23 = vadd.f32 %v3141_v20, %v114_v22 }
  0xe3   :  { %293 = vrot.lane.b32.xlu1 %v3709_v23, %s3601_s11 }
  0xe7   :  { %v3302_v25 = vpop.f32.mrb[2].mxu1 }
  0xe8   :  { %v198_v26 = vpop.f32.mrb[3].mxu1  ;;  %v3721_v28 = vadd.f32 %v3302_v25, %v3144_v24 }
  0xe9   :  { %v199_v27 = vadd.f32 %v3144_v24, %v198_v26 }
  0xeb   :  { %585 = vrot.lane.b32.xlu0 %v199_v27, %s3601_s11  ;;  %597 = vrot.lane.b32.xlu1 %v199_v27, %s3602_s13 }
  0xef   :  { %591 = vrot.lane.b32.xlu0 %v199_v27, %s3603_s14  ;;  %305 = vrot.lane.b32.xlu1 %v3709_v23, %s3602_s13  ;;  %v3313_v42 = vpop.f32.mrb[4].mxu1 }
  0xf0   :  { %v3748_v44 = vadd.f32 %v3313_v42, %v3147_v41  ;;  %v282_v45 = vpop.f32.mrb[5].mxu1 }
  0xf1   :  { %v3752_v49 = vadd.f32 %v3147_v41, %v282_v45 }
  0xf3   :  { %299 = vrot.lane.b32.xlu0 %v3709_v23, %s3603_s14  ;;  %593 = vrot.lane.b32.xlu1 %v3721_v28, %s3603_s14 }
  0xf7   :  { %587 = vrot.lane.b32.xlu0 %v3721_v28, %s3601_s11  ;;  %295 = vrot.lane.b32.xlu1 %v3727_v29, %s3601_s11 }
  0xfb   :  { %599 = vrot.lane.b32.xlu0 %v3721_v28, %s3602_s13  ;;  %307 = vrot.lane.b32.xlu1 %v3727_v29, %s3602_s13 }
  0xff   :  { %301 = vrot.lane.b32.xlu0 %v3727_v29, %s3603_s14  ;;  %877 = vrot.lane.b32.xlu1 %v3752_v49, %s3601_s11 }
 0x155   :  { %v294_v34 = vpop.permute.xlu1 %293 }
 0x15d   :  { %v586_v39 = vpop.permute.xlu0 %585  ;;  %v598_v40 = vpop.permute.xlu1 %597 }
 0x15e   :  { %v619_v47 = vcombine.low %v586_v39, %v598_v40  ;;  %v620_v48 = vcombine.high %v586_v39, %v598_v40 }
 0x160   :  { %v627_v57 = vrot.slane %v619_v47, %v3750_v46  ;;  %v634_v58 = vrot.slane %v620_v48, %v3750_v46 }
 0x161   :  { %v592_v50 = vpop.permute.xlu0 %591  ;;  %v306_v51 = vpop.permute.xlu1 %305 }
 0x162   :  { %v603_v52 = vcombine.low %v199_v27, %v592_v50  ;;  %v604_v53 = vcombine.high %v199_v27, %v592_v50  ;;  %v327_v54 = vcombine.low %v294_v34, %v306_v51  ;;  %v328_v55 = vcombine.high %v294_v34, %v306_v51 }
 0x164   :  { %v611_v59 = vrot.slane %v603_v52, %v3750_v46  ;;  %v618_v60 = vrot.slane %v604_v53, %v3750_v46  ;;  %v335_v61 = vrot.slane %v327_v54, %v3750_v46  ;;  %v342_v62 = vrot.slane %v328_v55, %v3750_v46 }
 0x165   :  { %v300_v63 = vpop.permute.xlu0 %299  ;;  %v594_v0 = vpop.permute.xlu1 %593 }
 0x166   :  { %v635_v1 = vcombine.low %v611_v59, %v627_v57  ;;  %v636_v2 = vcombine.high %v611_v59, %v627_v57  ;;  %v651_v3 = vcombine.low %v618_v60, %v634_v58  ;;  %v652_v4 = vcombine.high %v618_v60, %v634_v58 }
 0x167   :  { %v311_v5 = vcombine.low %v3709_v23, %v300_v63  ;;  %v312_v6 = vcombine.high %v3709_v23, %v300_v63  ;;  %v671_v7 = vcombine.low %v3721_v28, %v594_v0  ;;  %v672_v8 = vcombine.high %v3721_v28, %v594_v0 }
 0x168   :  { %v643_v9 = vrot.slane %v635_v1, %v3756_v56  ;;  %v650_v10 = vrot.slane %v636_v2, %v3756_v56  ;;  %v659_v11 = vrot.slane %v651_v3, %v3756_v56  ;;  %v666_v12 = vrot.slane %v652_v4, %v3756_v56 }
 0x169   :  { %v319_v13 = vrot.slane %v311_v5, %v3750_v46  ;;  %v326_v14 = vrot.slane %v312_v6, %v3750_v46  ;;  %v679_v15 = vrot.slane %v671_v7, %v3750_v46  ;;  %v686_v16 = vrot.slane %v672_v8, %v3750_v46  ;;  %v588_v17 = vpop.permute.xlu0 %587  ;;  %v296_v18 = vpop.permute.xlu1 %295 }
 0x16a   :  { %v739_v19 = vcombine.low %v643_v9, %v650_v10  ;;  %v3154_v20 = vcombine.high %v643_v9, %v650_v10  ;;  %v755_v21 = vcombine.low %v659_v11, %v666_v12  ;;  %v3155_v22 = vcombine.high %v659_v11, %v666_v12 }
 0x16b   :  { %v343_v23 = vcombine.low %v319_v13, %v335_v61  ;;  %v344_v24 = vcombine.high %v319_v13, %v335_v61  ;;  %v359_v25 = vcombine.low %v326_v14, %v342_v62  ;;  %v360_v26 = vcombine.high %v326_v14, %v342_v62 }
 0x16c   :  { %v3777_v27 = vrot.slane %v739_v19, %v3750_v46  ;;  %v3780_v28 = vrot.slane %v3154_v20, %v3750_v46  ;;  %v3783_v31 = vrot.slane %v755_v21, %v3750_v46  ;;  %v3786_v32 = vrot.slane %v3155_v22, %v3750_v46 }
 0x16d   :  { %v351_v33 = vrot.slane %v343_v23, %v3756_v56  ;;  %v358_v34 = vrot.slane %v344_v24, %v3756_v56  ;;  %v367_v35 = vrot.slane %v359_v25, %v3756_v56  ;;  %v374_v36 = vrot.slane %v360_v26, %v3756_v56  ;;  %v600_v37 = vpop.permute.xlu0 %599  ;;  %v308_v38 = vpop.permute.xlu1 %307 }
 0x16e   :  { %v771_v39 = vcombine.low %v3777_v27, %v3780_v28  ;;  %v787_v40 = vcombine.low %v3783_v31, %v3786_v32  ;;  %v687_v41 = vcombine.low %v588_v17, %v600_v37  ;;  %v688_v42 = vcombine.high %v588_v17, %v600_v37 }
 0x16f   :  { %v447_v43 = vcombine.low %v351_v33, %v358_v34  ;;  %v3150_v45 = vcombine.high %v351_v33, %v358_v34  ;;  %v463_v47 = vcombine.low %v367_v35, %v374_v36  ;;  %v3151_v48 = vcombine.high %v367_v35, %v374_v36 }
 0x170   :  { %v695_v50 = vrot.slane %v687_v41, %v3750_v46  ;;  %v702_v51 = vrot.slane %v688_v42, %v3750_v46  ;;  %v395_v52 = vcombine.low %v296_v18, %v308_v38  ;;  %v396_v53 = vcombine.high %v296_v18, %v308_v38 }
 0x171   :  { %v3799_v54 = vrot.slane %v447_v43, %v3750_v46  ;;  %v3802_v55 = vrot.slane %v3150_v45, %v3750_v46  ;;  %v3805_v57 = vrot.slane %v463_v47, %v3750_v46  ;;  %v3808_v58 = vrot.slane %v3151_v48, %v3750_v46  ;;  %v302_v63 = vpop.permute.xlu0 %301 }
 0x172   :  { %v703_v59 = vcombine.low %v679_v15, %v695_v50  ;;  %v704_v60 = vcombine.high %v679_v15, %v695_v50  ;;  %v719_v61 = vcombine.low %v686_v16, %v702_v51  ;;  %v720_v62 = vcombine.high %v686_v16, %v702_v51 }
 0x173   :  { %v479_v0 = vcombine.low %v3799_v54, %v3802_v55  ;;  %v495_v1 = vcombine.low %v3805_v57, %v3808_v58  ;;  %v403_v2 = vrot.slane %v395_v52, %v3750_v46  ;;  %v410_v3 = vrot.slane %v396_v53, %v3750_v46 }
 0x174   :  { %v711_v4 = vrot.slane %v703_v59, %v3756_v56  ;;  %v718_v5 = vrot.slane %v704_v60, %v3756_v56  ;;  %v727_v6 = vrot.slane %v719_v61, %v3756_v56  ;;  %v734_v7 = vrot.slane %v720_v62, %v3756_v56 }
 0x175   :  { %v379_v8 = vcombine.low %v3727_v29, %v302_v63  ;;  %v380_v9 = vcombine.high %v3727_v29, %v302_v63  ;;  %v779_v10 = vrot.slane %v771_v39, %v3756_v56  ;;  %v795_v11 = vrot.slane %v787_v40, %v3756_v56 }
 0x176   :  { %v807_v12 = vcombine.low %v711_v4, %v718_v5  ;;  %v3156_v13 = vcombine.high %v711_v4, %v718_v5  ;;  %v823_v14 = vcombine.low %v727_v6, %v734_v7  ;;  %v3157_v15 = vcombine.high %v727_v6, %v734_v7 }
 0x177   :  { %v387_v16 = vrot.slane %v379_v8, %v3750_v46  ;;  %v394_v17 = vrot.slane %v380_v9, %v3750_v46  ;;  %v803_v18 = vcombine.low %v779_v10, %v795_v11  ;;  %v772_v19 = vcombine.high %v3777_v27, %v3780_v28 }
 0x178   :  { %v814_v20 = vrot.slane %v807_v12, %v3750_v46  ;;  %v822_v29 = vrot.slane %v3156_v13, %v3750_v46  ;;  %v830_v21 = vrot.slane %v823_v14, %v3750_v46  ;;  %v838_v22 = vrot.slane %v3157_v15, %v3750_v46 }
 0x179   :  { %v411_v23 = vcombine.low %v387_v16, %v403_v2  ;;  %v412_v24 = vcombine.high %v387_v16, %v403_v2  ;;  %v427_v25 = vcombine.low %v394_v17, %v410_v3  ;;  %v428_v26 = vcombine.high %v394_v17, %v410_v3  ;;  %3315 = vmatpush3.xpose.msk.msra.mxu1 %vm1167_vm2, %v803_v18 }
 0x17a   :  { %v839_v33 = vcombine.low %v814_v20, %v822_v29  ;;  %v855_v34 = vcombine.low %v830_v21, %v838_v22  ;;  %3319 = vmatprep.subr.mxu1 %v3604_v30  ;;  %v786_v37 = vrot.slane %v772_v19, %v3756_v56  ;;  %v788_v38 = vcombine.high %v3783_v31, %v3786_v32 }
 0x17b   :  { %v419_v27 = vrot.slane %v411_v23, %v3756_v56  ;;  %v426_v28 = vrot.slane %v412_v24, %v3756_v56  ;;  %v435_v35 = vrot.slane %v427_v25, %v3756_v56  ;;  %v442_v36 = vrot.slane %v428_v26, %v3756_v56 }
 0x17c   :  { %v487_v39 = vrot.slane %v479_v0, %v3756_v56  ;;  %v503_v40 = vrot.slane %v495_v1, %v3756_v56  ;;  %v802_v47 = vrot.slane %v788_v38, %v3756_v56  ;;  %v804_v50 = vcombine.high %v779_v10, %v795_v11 }
 0x17d   :  { %v515_v41 = vcombine.low %v419_v27, %v426_v28  ;;  %v3152_v42 = vcombine.high %v419_v27, %v426_v28  ;;  %v531_v43 = vcombine.low %v435_v35, %v442_v36  ;;  %v3153_v45 = vcombine.high %v435_v35, %v442_v36 }
 0x17e   :  { %v511_v48 = vcombine.low %v487_v39, %v503_v40  ;;  %v480_v51 = vcombine.high %v3799_v54, %v3802_v55  ;;  %v840_v59 = vcombine.high %v814_v20, %v822_v29  ;;  %v805_v60 = vcombine.low %v786_v37, %v802_v47 }
 0x17f   :  { %v522_v52 = vrot.slane %v515_v41, %v3750_v46  ;;  %v530_v53 = vrot.slane %v3152_v42, %v3750_v46  ;;  %v538_v31 = vrot.slane %v531_v43, %v3750_v46  ;;  %v546_v32 = vrot.slane %v3153_v45, %v3750_v46 }
 0x180   :  { %3317 = vmatmul.mubr.msk.f32.vlgmr.msra.gmra.mrb[6].mxu1 %vm1167_vm2, %v511_v48  ;;  %v494_v61 = vrot.slane %v480_v51, %v3756_v56  ;;  %v496_v62 = vcombine.high %v3805_v57, %v3808_v58  ;;  %v856_v63 = vcombine.high %v830_v21, %v838_v22  ;;  %v806_v55 = vcombine.high %v786_v37, %v802_v47 }
 0x181   :  { %v547_v0 = vcombine.low %v522_v52, %v530_v53  ;;  %v563_v54 = vcombine.low %v538_v31, %v546_v32  ;;  %3320 = vmatpush3.xpose.msk.msra.mxu1 %vm1167_vm2, %v804_v50  ;;  %3325 = vmatpush3.xpose.msk.msra.mxu0 %vm1167_vm2, %v805_v60  ;;  %v512_v2 = vcombine.high %v487_v39, %v503_v40 }
 0x182   :  { %v510_v1 = vrot.slane %v496_v62, %v3756_v56  ;;  %3321 = vmatprep.mubr.msk.f32.mxu1 %vm3605_vm1, %v3604_v30  ;;  %v847_v3 = vrot.slane %v839_v33, %v3756_v56  ;;  %3329 = vmatprep.subr.mxu1 %v3604_v30  ;;  %v863_v57 = vrot.slane %v855_v34, %v3756_v56  ;;  %v878_v62 = vpop.permute.xlu1 %877 }
 0x183   :  { %3334 = vmatprep.subr.mxu0 %v3604_v30  ;;  %v555_v58 = vrot.slane %v547_v0, %v3756_v56  ;;  %v571_v4 = vrot.slane %v563_v54, %v3756_v56  ;;  %v548_v5 = vcombine.high %v522_v52, %v530_v53  ;;  %v564_v6 = vcombine.high %v538_v31, %v546_v32 }
 0x184   :  { %v513_v7 = vcombine.low %v494_v61, %v510_v1  ;;  %3322 = vmatmul.mubr.msk.f32.vlgmr.msra.gmra.mrb[8].mxu1 %vm1167_vm2, %v512_v2  ;;  %v854_v8 = vrot.slane %v840_v59, %v3756_v56  ;;  %v871_v9 = vcombine.low %v847_v3, %v863_v57  ;;  %v872_v10 = vcombine.high %v847_v3, %v863_v57 }
 0x185   :  { %3330 = vmatpush3.xpose.msk.msra.mxu1 %vm1167_vm2, %v806_v55  ;;  %3331 = vmatprep.mubr.msk.f32.mxu1 %vm3605_vm1, %v3604_v30  ;;  %v870_v11 = vrot.slane %v856_v63, %v3756_v56  ;;  %v514_v12 = vcombine.high %v494_v61, %v510_v1  ;;  %v579_v13 = vcombine.low %v555_v58, %v571_v4 }
 0x186   :  { %3327 = vmatmul.mubr.msk.f32.vlgmr.msra.gmra.mrb[0].mxu0 %vm1167_vm2, %v513_v7  ;;  %3339 = vmatprep.subr.mxu1 %v3604_v30  ;;  %v580_v14 = vcombine.high %v555_v58, %v571_v4  ;;  %v562_v15 = vrot.slane %v548_v5, %v3756_v56  ;;  %v578_v16 = vrot.slane %v564_v6, %v3756_v56 }
 0x187   :  { %3335 = vmatpush3.xpose.msk.msra.mxu0 %vm1167_vm2, %v871_v9  ;;  %3336 = vmatprep.mubr.msk.f32.mxu0 %vm3605_vm1, %v3604_v30  ;;  %v873_v17 = vcombine.low %v854_v8, %v870_v11  ;;  %v874_v18 = vcombine.high %v854_v8, %v870_v11 }
 0x188   :  { %3332 = vmatmul.mubr.msk.f32.vlgmr.msra.gmra.mrb[10].mxu1 %vm1167_vm2, %v514_v12  ;;  %3344 = vmatprep.subr.mxu0 %v3604_v30  ;;  %v581_v19 = vcombine.low %v562_v15, %v578_v16  ;;  %v582_v20 = vcombine.high %v562_v15, %v578_v16 }
 0x189   :  { %3340 = vmatpush3.xpose.msk.msra.mxu1 %vm1167_vm2, %v872_v10  ;;  %3341 = vmatprep.mubr.msk.f32.mxu1 %vm3605_vm1, %v3604_v30 }
 0x18a   :  { %3349 = vmatprep.subr.mxu1 %v3604_v30  ;;  %3337 = vmatmul.mubr.msk.f32.vlgmr.msra.gmra.mrb[2].mxu0 %vm1167_vm2, %v579_v13 }
 0x18b   :  { %3345 = vmatpush3.xpose.msk.msra.mxu0 %vm1167_vm2, %v873_v17  ;;  %3346 = vmatprep.mubr.msk.f32.mxu0 %vm3605_vm1, %v3604_v30 }
 0x18c   :  { %3342 = vmatmul.mubr.msk.f32.vlgmr.msra.gmra.mrb[12].mxu1 %vm1167_vm2, %v580_v14  ;;  %3354 = vmatprep.subr.mxu0 %v3604_v30 }
 0x18d   :  { %3350 = vmatpush3.xpose.msk.msra.mxu1 %vm1167_vm2, %v874_v18  ;;  %3351 = vmatprep.mubr.msk.f32.mxu1 %vm3605_vm1, %v3604_v30 }
 0x18e   :  { %3347 = vmatmul.mubr.msk.f32.vlgmr.msra.gmra.mrb[4].mxu0 %vm1167_vm2, %v581_v19  ;;  %3359 = vmatprep.subr.mxu1 %v3604_v30 }
 0x18f   :  { %3356 = vmatprep.mubr.msk.f32.mxu0 %vm3605_vm1, %v3604_v30 }
 0x190   :  { %3352 = vmatmul.mubr.msk.f32.vlgmr.msra.gmra.mrb[14].mxu1 %vm1167_vm2, %v582_v20 }
 0x191   :  { %3361 = vmatprep.mubr.msk.f32.mxu1 %vm3605_vm1, %v3604_v30 }
 0x253   :  { %v1240_v29 = vpop.f32.mrb[6].mxu1 }
 0x254   :  { %v1776_v21 = vmul.f32 0.35355338, %v1240_v29  ;;  %v3318_v22 = vpop.f32.mrb[7].mxu1 }
 0x256   :  { %v1784_v23 = vsel %vm1167_vm2, %v1776_v21, -inf }
 0x257   :  { %1785 = vmax.xlane.f32.xlu0 %v1784_v23  ;;  %v1316_v24 = vpop.f32.mrb[8].mxu1 }
 0x258   :  { %v1777_v25 = vmul.f32 0.35355338, %v1316_v24  ;;  %v3323_v26 = vpop.f32.mrb[9].mxu1 }
 0x259   :  { %v1392_v33 = vpop.f32.mrb[0].mxu0 }
 0x25a   :  { %v1778_v34 = vmul.f32 0.35355338, %v1392_v33  ;;  %v3328_v27 = vpop.f32.mrb[1].mxu0  ;;  %v1787_v28 = vsel %vm1167_vm2, %v1777_v25, -inf }
 0x25b   :  { %1788 = vmax.xlane.f32.xlu1 %v1787_v28  ;;  %v1468_v35 = vpop.f32.mrb[10].mxu1 }
 0x25c   :  { %v1790_v36 = vsel %vm1167_vm2, %v1778_v34, -inf  ;;  %v1779_v37 = vmul.f32 0.35355338, %v1468_v35  ;;  %v3333_v38 = vpop.f32.mrb[11].mxu1 }
 0x25d   :  { %1791 = vmax.xlane.f32.xlu0 %v1790_v36  ;;  %v1544_v39 = vpop.f32.mrb[2].mxu0 }
 0x25e   :  { %v1793_v40 = vsel %vm1167_vm2, %v1779_v37, -inf  ;;  %v1780_v41 = vmul.f32 0.35355338, %v1544_v39  ;;  %v3338_v42 = vpop.f32.mrb[3].mxu0 }
 0x25f   :  { %v1620_v43 = vpop.f32.mrb[12].mxu1 }
 0x260   :  { %v1781_v45 = vmul.f32 0.35355338, %v1620_v43  ;;  %v3343_v47 = vpop.f32.mrb[13].mxu1  ;;  %v1796_v48 = vsel %vm1167_vm2, %v1780_v41, -inf }
 0x261   :  { %1794 = vmax.xlane.f32.xlu0 %v1793_v40  ;;  %1797 = vmax.xlane.f32.xlu1 %v1796_v48  ;;  %v1696_v50 = vpop.f32.mrb[4].mxu0 }
 0x262   :  { %v1799_v51 = vsel %vm1167_vm2, %v1781_v45, -inf  ;;  %v1782_v52 = vmul.f32 0.35355338, %v1696_v50  ;;  %v3348_v53 = vpop.f32.mrb[5].mxu0 }
 0x263   :  { %v1772_v31 = vpop.f32.mrb[14].mxu1 }
 0x264   :  { %v3906_v32 = vmul.f32 0.35355338, %v1772_v31  ;;  %v3353_v59 = vpop.f32.mrb[15].mxu1  ;;  %v1802_v60 = vsel %vm1167_vm2, %v1782_v52, -inf }
 0x265   :  { %1800 = vmax.xlane.f32.xlu0 %v1799_v51  ;;  %1803 = vmax.xlane.f32.xlu1 %v1802_v60 }
 0x266   :  { %v1805_v61 = vsel %vm1167_vm2, %v3906_v32, -inf }
 0x269   :  { %1806 = vmax.xlane.f32.xlu0 %v1805_v61 }
 0x276   :  { %889 = vrot.lane.b32.xlu1 %v3752_v49, %s3602_s13 }
 0x27f   :  { %883 = vrot.lane.b32.xlu0 %v3752_v49, %s3603_s14 }
 0x2e4   :  { %v1786_v63 = vpop.xlane.xlu0 %1785 }
 0x2e5   :  { %v1808_v0 = vsub.f32 %v1776_v21, %v1786_v63 }
 0x2e7   :  { %v1816_v54 = vmul.f32 1.442695, %v1808_v0 }
 0x2e8   :  { %v1789_v55 = vpop.xlane.xlu1 %1788 }
 0x2e9   :  { %3535 = vpow2.f32 %v1816_v54  ;;  %v1809_v1 = vsub.f32 %v1777_v25, %v1789_v55 }
 0x2ea   :  { %v1792_v2 = vpop.xlane.xlu0 %1791 }
 0x2eb   :  { %v1810_v3 = vsub.f32 %v1778_v34, %v1792_v2  ;;  %v1818_v57 = vmul.f32 1.442695, %v1809_v1 }
 0x2ed   :  { %v1820_v58 = vmul.f32 1.442695, %v1810_v3  ;;  %3537 = vpow2.f32 %v1818_v57 }
 0x2ee   :  { %v1795_v4 = vpop.xlane.xlu0 %1794  ;;  %v1798_v5 = vpop.xlane.xlu1 %1797 }
 0x2ef   :  { %3539 = vpow2.f32 %v1820_v58  ;;  %v1811_v6 = vsub.f32 %v1779_v37, %v1795_v4  ;;  %v1812_v7 = vsub.f32 %v1780_v41, %v1798_v5 }
 0x2f1   :  { %v1822_v8 = vmul.f32 1.442695, %v1811_v6  ;;  %v1824_v9 = vmul.f32 1.442695, %v1812_v7 }
 0x2f2   :  { %v1801_v10 = vpop.xlane.xlu0 %1800  ;;  %v1804_v11 = vpop.xlane.xlu1 %1803 }
 0x2f3   :  { %v3915_v12 = vpop.eup %3535  ;;  %3541 = vpow2.f32 %v1822_v8  ;;  %v1813_v13 = vsub.f32 %v1781_v45, %v1801_v10  ;;  %v1814_v14 = vsub.f32 %v1782_v52, %v1804_v11 }
 0x2f4   :  { %3543 = vpow2.f32 %v1824_v9  ;;  %v1832_v15 = vsel %vm1167_vm2, %v3915_v12, 0.0 }
 0x2f5   :  { %v1828_v16 = vmul.f32 1.442695, %v1814_v14  ;;  %1833 = vadd.xlane.f32.xlu1 %v1832_v15  ;;  %v1826_v17 = vmul.f32 1.442695, %v1813_v13 }
 0x2f6   :  { %v3919_v18 = vpop.xlane.xlu0 %1806  ;;  %v890_v19 = vpop.permute.xlu1 %889 }
 0x2f7   :  { %v3921_v20 = vpop.eup %3537  ;;  %v911_v29 = vcombine.low %v878_v62, %v890_v19  ;;  %v912_v21 = vcombine.high %v878_v62, %v890_v19  ;;  %3545 = vpow2.f32 %v1828_v16  ;;  %v1815_v10 = vsub.f32 %v3906_v32, %v3919_v18 }
 0x2f8   :  { %v1835_v22 = vsel %vm1167_vm2, %v3921_v20, 0.0  ;;  %3547 = vpow2.f32 %v1826_v17 }
 0x2f9   :  { %v3925_v23 = vpop.eup %3539  ;;  %1836 = vadd.xlane.f32.xlu0 %v1835_v22  ;;  %v919_v34 = vrot.slane %v911_v29, %v3750_v46  ;;  %v926_v27 = vrot.slane %v912_v21, %v3750_v46  ;;  %v1830_v11 = vmul.f32 1.442695, %v1815_v10 }
 0x2fa   :  { %v884_v24 = vpop.permute.xlu0 %883  ;;  %v1838_v25 = vsel %vm1167_vm2, %v3925_v23, 0.0 }
 0x2fb   :  { %v895_v26 = vcombine.low %v3752_v49, %v884_v24  ;;  %v896_v33 = vcombine.high %v3752_v49, %v884_v24  ;;  %1839 = vadd.xlane.f32.xlu1 %v1838_v25  ;;  %3549 = vpow2.f32 %v1830_v11 }
 0x2fd   :  { %v3933_v28 = vpop.eup %3541  ;;  %v903_v35 = vrot.slane %v895_v26, %v3750_v46  ;;  %v910_v36 = vrot.slane %v896_v33, %v3750_v46 }
 0x2fe   :  { %v3937_v37 = vpop.eup %3543  ;;  %v1841_v38 = vsel %vm1167_vm2, %v3933_v28, 0.0 }
 0x2ff   :  { %v927_v39 = vcombine.low %v903_v35, %v919_v34  ;;  %v928_v40 = vcombine.high %v903_v35, %v919_v34  ;;  %v943_v41 = vcombine.low %v910_v36, %v926_v27  ;;  %v944_v49 = vcombine.high %v910_v36, %v926_v27  ;;  %1842 = vadd.xlane.f32.xlu0 %v1841_v38 }
 0x300   :  { %v1844_v42 = vsel %vm1167_vm2, %v3937_v37, 0.0 }
 0x301   :  { %v935_v43 = vrot.slane %v927_v39, %v3756_v56  ;;  %v942_v45 = vrot.slane %v928_v40, %v3756_v56  ;;  %v951_v47 = vrot.slane %v943_v41, %v3756_v56  ;;  %v958_v48 = vrot.slane %v944_v49, %v3756_v56  ;;  %1845 = vadd.xlane.f32.xlu1 %v1844_v42  ;;  %v3947_v50 = vpop.eup %3545 }
 0x302   :  { %v3949_v59 = vpop.eup %3547  ;;  %v1850_v60 = vsel %vm1167_vm2, %v3947_v50, 0.0 }
 0x303   :  { %v1031_v51 = vcombine.low %v935_v43, %v942_v45  ;;  %v3158_v52 = vcombine.high %v935_v43, %v942_v45  ;;  %v1047_v53 = vcombine.low %v951_v47, %v958_v48  ;;  %v3159_v31 = vcombine.high %v951_v47, %v958_v48  ;;  %1851 = vadd.xlane.f32.xlu0 %v1850_v60 }
 0x304   :  { %v1847_v3 = vsel %vm1167_vm2, %v3949_v59, 0.0 }
 0x305   :  { %v1038_v61 = vrot.slane %v1031_v51, %v3750_v46  ;;  %v1046_v62 = vrot.slane %v3158_v52, %v3750_v46  ;;  %v1054_v63 = vrot.slane %v1047_v53, %v3750_v46  ;;  %v1062_v0 = vrot.slane %v3159_v31, %v3750_v46  ;;  %v3971_v13 = vpop.eup %3549 }
 0x306   :  { %v1853_v14 = vsel %vm1167_vm2, %v3971_v13, 0.0 }
 0x307   :  { %v1063_v54 = vcombine.low %v1038_v61, %v1046_v62  ;;  %v1079_v55 = vcombine.low %v1054_v63, %v1062_v0  ;;  %v1064_v1 = vcombine.high %v1038_v61, %v1046_v62  ;;  %v1080_v2 = vcombine.high %v1054_v63, %v1062_v0  ;;  %1848 = vadd.xlane.f32.xlu0 %v1847_v3 }
 0x309   :  { %v1071_v57 = vrot.slane %v1063_v54, %v3756_v56  ;;  %v1087_v58 = vrot.slane %v1079_v55, %v3756_v56  ;;  %v1078_v4 = vrot.slane %v1064_v1, %v3756_v56  ;;  %v1094_v5 = vrot.slane %v1080_v2, %v3756_v56 }
 0x30b   :  { %v1095_v6 = vcombine.low %v1071_v57, %v1087_v58  ;;  %v1096_v7 = vcombine.high %v1071_v57, %v1087_v58  ;;  %v1097_v8 = vcombine.low %v1078_v4, %v1094_v5  ;;  %v1098_v9 = vcombine.high %v1078_v4, %v1094_v5 }
 0x30d   :  { %3355 = vmatpush3.msra.mxu0 %v1095_v6  ;;  %3360 = vmatpush3.msra.mxu1 %v1096_v7 }
 0x30e   :  { %3364 = vmatprep.subr.mxu0 %v3604_v30  ;;  %3369 = vmatprep.subr.mxu1 %v3604_v30 }
 0x312   :  { %885 = vrot.lane.b32.xlu1 %v3748_v44, %s3603_s14 }
 0x31d   :  { %879 = vrot.lane.b32.xlu0 %v3748_v44, %s3601_s11 }
 0x336   :  { %1854 = vadd.xlane.f32.xlu1 %v1853_v14 }
 0x347   :  { %891 = vrot.lane.b32.xlu1 %v3748_v44, %s3602_s13 }
 0x382   :  { %v1834_v15 = vpop.xlane.xlu1 %1833 }
 0x383   :  { %3551 = vrcp.f32 %v1834_v15 }
 0x386   :  { %v1837_v16 = vpop.xlane.xlu0 %1836 }
 0x387   :  { %3553 = vrcp.f32 %v1837_v16 }
 0x388   :  { %v1840_v17 = vpop.xlane.xlu1 %1839 }
 0x389   :  { %3555 = vrcp.f32 %v1840_v17 }
 0x38c   :  { %v1843_v19 = vpop.xlane.xlu0 %1842 }
 0x38d   :  { %v3552_v29 = vpop.eup %3551  ;;  %3557 = vrcp.f32 %v1843_v19 }
 0x38e   :  { %v1857_v32 = vmul.f32 %v3552_v29, %v3915_v12 }
 0x390   :  { %3357 = vmatmul.mubr.msk.f32.vlgmr.msra.gmra.mrb[6].mxu0 %vm1167_vm2, %v1857_v32  ;;  %v1852_v25 = vpop.xlane.xlu0 %1851 }
 0x391   :  { %v3554_v18 = vpop.eup %3553  ;;  %3365 = vmatpush3.msra.mxu0 %v1097_v8  ;;  %3366 = vmatprep.mubr.msk.f32.mxu0 %vm3605_vm1, %v3604_v30 }
 0x392   :  { %v1859_v21 = vmul.f32 %v3554_v18, %v3921_v20  ;;  %3374 = vmatprep.subr.mxu0 %v3604_v30 }
 0x393   :  { %v3556_v22 = vpop.eup %3555 }
 0x394   :  { %v1861_v24 = vmul.f32 %v3556_v22, %v3925_v23  ;;  %3362 = vmatmul.mubr.msk.f32.vlgmr.msra.gmra.mrb[16].mxu1 %vm1167_vm2, %v1859_v21  ;;  %v1846_v23 = vpop.xlane.xlu1 %1845  ;;  %v1849_v33 = vpop.xlane.xlu0 %1848 }
 0x395   :  { %3370 = vmatpush3.msra.mxu1 %v1098_v9  ;;  %3371 = vmatprep.mubr.msk.f32.mxu1 %vm3605_vm1, %v3604_v30  ;;  %3559 = vrcp.f32 %v1846_v23 }
 0x396   :  { %3367 = vmatmul.mubr.msk.f32.vlgmr.msra.gmra.mrb[8].mxu0 %vm1167_vm2, %v1861_v24  ;;  %3379 = vmatprep.subr.mxu1 %v3604_v30  ;;  %3561 = vrcp.f32 %v1849_v33 }
 0x397   :  { %v3558_v12 = vpop.eup %3557  ;;  %3376 = vmatprep.mubr.msk.f32.mxu0 %vm3605_vm1, %v3604_v30  ;;  %3563 = vrcp.f32 %v1852_v25 }
 0x398   :  { %v1863_v20 = vmul.f32 %v3558_v12, %v3933_v28  ;;  %v886_v26 = vpop.permute.xlu1 %885  ;;  %v880_v36 = vpop.permute.xlu0 %879 }
 0x399   :  { %v963_v27 = vcombine.low %v3748_v44, %v886_v26  ;;  %v964_v35 = vcombine.high %v3748_v44, %v886_v26 }
 0x39a   :  { %3372 = vmatmul.mubr.msk.f32.vlgmr.msra.gmra.mrb[18].mxu1 %vm1167_vm2, %v1863_v20 }
 0x39b   :  { %3381 = vmatprep.mubr.msk.f32.mxu1 %vm3605_vm1, %v3604_v30  ;;  %v971_v28 = vrot.slane %v963_v27, %v3750_v46  ;;  %v978_v41 = vrot.slane %v964_v35, %v3750_v46 }
 0x39f   :  { %v3560_v1 = vpop.eup %3559 }
 0x3a0   :  { %v3562_v4 = vpop.eup %3561  ;;  %v1865_v15 = vmul.f32 %v3560_v1, %v3937_v37 }
 0x3a1   :  { %v3564_v7 = vpop.eup %3563  ;;  %v1867_v16 = vmul.f32 %v3562_v4, %v3949_v59 }
 0x3a2   :  { %v1869_v29 = vmul.f32 %v3564_v7, %v3947_v50 }
 0x3c3   :  { %v1855_v34 = vpop.xlane.xlu1 %1854 }
 0x3c4   :  { %3565 = vrcp.f32 %v1855_v34 }
 0x3c7   :  { %v892_v38 = vpop.permute.xlu1 %891 }
 0x3c8   :  { %v979_v39 = vcombine.low %v880_v36, %v892_v38  ;;  %v980_v40 = vcombine.high %v880_v36, %v892_v38 }
 0x3ca   :  { %v987_v49 = vrot.slane %v979_v39, %v3750_v46  ;;  %v994_v42 = vrot.slane %v980_v40, %v3750_v46 }
 0x3cc   :  { %v995_v43 = vcombine.low %v971_v28, %v987_v49  ;;  %v996_v45 = vcombine.high %v971_v28, %v987_v49  ;;  %v1011_v47 = vcombine.low %v978_v41, %v994_v42  ;;  %v1012_v48 = vcombine.high %v978_v41, %v994_v42 }
 0x3ce   :  { %v1003_v44 = vrot.slane %v995_v43, %v3756_v56  ;;  %v1010_v51 = vrot.slane %v996_v45, %v3756_v56  ;;  %v1019_v52 = vrot.slane %v1011_v47, %v3756_v56  ;;  %v1026_v53 = vrot.slane %v1012_v48, %v3756_v56  ;;  %v3566_v14 = vpop.eup %3565 }
 0x3cf   :  { %v1871_v32 = vmul.f32 %v3566_v14, %v3971_v13 }
 0x3d0   :  { %v1099_v31 = vcombine.low %v1003_v44, %v1010_v51  ;;  %v3160_v60 = vcombine.high %v1003_v44, %v1010_v51  ;;  %v1115_v61 = vcombine.low %v1019_v52, %v1026_v53  ;;  %v3161_v62 = vcombine.high %v1019_v52, %v1026_v53 }
 0x3d2   :  { %v1106_v63 = vrot.slane %v1099_v31, %v3750_v46  ;;  %v1114_v0 = vrot.slane %v3160_v60, %v3750_v46  ;;  %v1122_v54 = vrot.slane %v1115_v61, %v3750_v46  ;;  %v1130_v55 = vrot.slane %v3161_v62, %v3750_v46 }
 0x3d4   :  { %v1131_v2 = vcombine.low %v1106_v63, %v1114_v0  ;;  %v1147_v3 = vcombine.low %v1122_v54, %v1130_v55  ;;  %v1132_v57 = vcombine.high %v1106_v63, %v1114_v0  ;;  %v1148_v58 = vcombine.high %v1122_v54, %v1130_v55 }
 0x3d6   :  { %v1139_v5 = vrot.slane %v1131_v2, %v3756_v56  ;;  %v1155_v6 = vrot.slane %v1147_v3, %v3756_v56  ;;  %v1146_v8 = vrot.slane %v1132_v57, %v3756_v56  ;;  %v1162_v9 = vrot.slane %v1148_v58, %v3756_v56 }
 0x3d8   :  { %v1163_v10 = vcombine.low %v1139_v5, %v1155_v6  ;;  %v1164_v11 = vcombine.high %v1139_v5, %v1155_v6  ;;  %v1165_v17 = vcombine.low %v1146_v8, %v1162_v9  ;;  %v1166_v19 = vcombine.high %v1146_v8, %v1162_v9 }
 0x3da   :  { %3375 = vmatpush3.msra.mxu0 %v1163_v10  ;;  %3380 = vmatpush3.msra.mxu1 %v1164_v11 }
 0x3db   :  { %3377 = vmatmul.mubr.msk.f32.vlgmr.msra.gmra.mrb[10].mxu0 %vm1167_vm2, %v1865_v15  ;;  %3382 = vmatmul.mubr.msk.f32.vlgmr.msra.gmra.mrb[20].mxu1 %vm1167_vm2, %v1867_v16 }
 0x3dc   :  { %3384 = vmatprep.subr.mxu0 %v3604_v30  ;;  %3389 = vmatprep.subr.mxu1 %v3604_v30 }
 0x3dd   :  { %3385 = vmatpush3.msra.mxu0 %v1165_v17  ;;  %3390 = vmatpush3.msra.mxu1 %v1166_v19 }
 0x3de   :  { %3386 = vmatprep.mubr.msk.f32.mxu0 %vm3605_vm1, %v3604_v30  ;;  %3391 = vmatprep.mubr.msk.f32.mxu1 %vm3605_vm1, %v3604_v30 }
 0x3df   :  { %3387 = vmatmul.mubr.msk.f32.vlgmr.msra.gmra.mrb[12].mxu0 %vm1167_vm2, %v1869_v29  ;;  %3392 = vmatmul.mubr.msk.f32.vlgmr.msra.gmra.mrb[22].mxu1 %vm1167_vm2, %v1871_v32 }
 0x463   :  { %v1941_v37 = vpop.f32.mrb[6].mxu0 }
 0x464   :  { %v3358_v59 = vpop.f32.mrb[7].mxu0 }
 0x467   :  { %v2014_v18 = vpop.f32.mrb[16].mxu1 }
 0x468   :  { %v3363_v21 = vpop.f32.mrb[17].mxu1 }
 0x469   :  { %v2087_v22 = vpop.f32.mrb[8].mxu0  ;;  %v2761_v21 = vld [vmem:[%s4213_s4 + $0x8] sm:$0xff] }
 0x46a   :  { %v2456_v50 = vcombine.low %v1941_v37, %v2087_v22  ;;  %v2457_v24 = vcombine.high %v1941_v37, %v2087_v22  ;;  %v3368_v13 = vpop.f32.mrb[9].mxu0 }
 0x46c   :  { %v2464_v26 = vrot.slane %v2456_v50, %v3750_v46  ;;  %v2471_v30 = vrot.slane %v2457_v24, %v3750_v46 }
 0x46d   :  { %v2160_v12 = vpop.f32.mrb[18].mxu1 }
 0x46e   :  { %v2472_v20 = vcombine.low %v2014_v18, %v2160_v12  ;;  %v2473_v23 = vcombine.high %v2014_v18, %v2160_v12  ;;  %v3373_v25 = vpop.f32.mrb[19].mxu1  ;;  %v2760_v18 = vld [vmem:[%s4213_s4] sm:$0xff] }
 0x46f   :  { %v3475_v12 = vpack.c.bf16 %v2761_v21, %v2760_v18  ;;  %v2894_v18 = vld [vmem:[%s4214_s5 + $0x8] sm:$0xff]  ;;  %v2895_v21 = vld [vmem:[%s4214_s5 + $0x10] sm:$0xff] }
 0x470   :  { %v2480_v33 = vrot.slane %v2472_v20, %v3750_v46  ;;  %v2487_v34 = vrot.slane %v2473_v23, %v3750_v46 }
 0x471   :  { %3476 = vmatprep.subr.bf16.mxu0 %v3475_v12 }
 0x472   :  { %v2488_v27 = vcombine.low %v2464_v26, %v2480_v33  ;;  %v2489_v35 = vcombine.high %v2464_v26, %v2480_v33  ;;  %v2504_v36 = vcombine.low %v2471_v30, %v2487_v34  ;;  %v2505_v38 = vcombine.high %v2471_v30, %v2487_v34  ;;  %v2762_v30 = vld [vmem:[%s4213_s4 + $0x10] sm:$0xff]  ;;  %v2763_v33 = vld [vmem:[%s4213_s4 + $0x18] sm:$0xff]  ;;  %3478 = vmatpush3.bf16.msra.mxu0 %v3475_v12  ;;  %v2986_v12 = vld [vmem:[%s4215_s6 + $0x8] sm:$0xff] }
 0x474   :  { %v2496_v39 = vrot.slane %v2488_v27, %v3756_v56  ;;  %v2503_v40 = vrot.slane %v2489_v35, %v3756_v56  ;;  %v2512_v28 = vrot.slane %v2504_v36, %v3756_v56  ;;  %v2519_v41 = vrot.slane %v2505_v38, %v3756_v56 }
 0x475   :  { %v3479_v38 = vpack.c.bf16 %v2763_v33, %v2762_v30  ;;  %v2989_v30 = vld [vmem:[%s4215_s6 + $0x20] sm:$0xff]  ;;  %v2990_v33 = vld [vmem:[%s4215_s6 + $0x28] sm:$0xff] }
 0x476   :  { %v2592_v49 = vcombine.low %v2496_v39, %v2503_v40  ;;  %v3186_v42 = vcombine.high %v2496_v39, %v2503_v40  ;;  %v2608_v43 = vcombine.low %v2512_v28, %v2519_v41  ;;  %v3187_v45 = vcombine.high %v2512_v28, %v2519_v41 }
 0x477   :  { %3480 = vmatprep.subr.bf16.mxu0 %v3479_v38 }
 0x478   :  { %v2599_v47 = vrot.slane %v2592_v49, %v3750_v46  ;;  %v2607_v48 = vrot.slane %v3186_v42, %v3750_v46  ;;  %v2615_v44 = vrot.slane %v2608_v43, %v3750_v46  ;;  %v2623_v51 = vrot.slane %v3187_v45, %v3750_v46  ;;  %3482 = vmatpush3.bf16.msra.mxu0 %v3479_v38  ;;  %v2993_v38 = vld [vmem:[%s4215_s6 + $0x40] sm:$0xff] }
 0x47a   :  { %v2624_v52 = vcombine.low %v2599_v47, %v2607_v48  ;;  %v2640_v53 = vcombine.low %v2615_v44, %v2623_v51  ;;  %v2625_v31 = vcombine.high %v2599_v47, %v2607_v48  ;;  %v2641_v60 = vcombine.high %v2615_v44, %v2623_v51 }
 0x47c   :  { %v4040_v61 = vrot.slane %v2624_v52, %v3756_v56  ;;  %v4043_v62 = vrot.slane %v2640_v53, %v3756_v56  ;;  %v2639_v63 = vrot.slane %v2625_v31, %v3756_v56  ;;  %v2655_v0 = vrot.slane %v2641_v60, %v3756_v56 }
 0x47e   :  { %v2657_v54 = vcombine.high %v4040_v61, %v4043_v62  ;;  %v2658_v55 = vcombine.low %v2639_v63, %v2655_v0  ;;  %v2659_v1 = vcombine.high %v2639_v63, %v2655_v0  ;;  %v2656_v2 = vcombine.low %v4040_v61, %v4043_v62  ;;  %v3190_v61 = vld [vmem:[%s4216_s7 + $0x3] ss:$0 sm:$0xff] }
 0x480   :  { %2730 = vrot.lane.b32.xlu0 %v2657_v54, %s3608_s17 }
 0x484   :  { %2738 = vrot.lane.b32.xlu0 %v2658_v55, %s3609_s18 }
 0x488   :  { %2746 = vrot.lane.b32.xlu0 %v2659_v1, %s3610_s1 }
 0x4ae   :  { %v2233_v3 = vpop.f32.mrb[10].mxu0  ;;  %v2306_v57 = vpop.f32.mrb[20].mxu1 }
 0x4af   :  { %v3378_v58 = vpop.f32.mrb[11].mxu0  ;;  %v3383_v4 = vpop.f32.mrb[21].mxu1 }
 0x4b0   :  { %v3575_v4 = vld [vmem:[%s4209_s0 + $0x8] sm:$0xff] }
 0x4b2   :  { %v2379_v5 = vpop.f32.mrb[12].mxu0  ;;  %v2452_v6 = vpop.f32.mrb[22].mxu1 }
 0x4b3   :  { %v2524_v7 = vcombine.low %v2233_v3, %v2379_v5  ;;  %v2525_v8 = vcombine.high %v2233_v3, %v2379_v5  ;;  %v2540_v9 = vcombine.low %v2306_v57, %v2452_v6  ;;  %v2541_v10 = vcombine.high %v2306_v57, %v2452_v6  ;;  %v3388_v11 = vpop.f32.mrb[13].mxu0  ;;  %v3393_v14 = vpop.f32.mrb[23].mxu1  ;;  %v3576_v6 = vld [vmem:[%s4209_s0] sm:$0xff] }
 0x4b5   :  { %v2532_v15 = vrot.slane %v2524_v7, %v3750_v46  ;;  %v2539_v16 = vrot.slane %v2525_v8, %v3750_v46  ;;  %v2548_v17 = vrot.slane %v2540_v9, %v3750_v46  ;;  %v2555_v19 = vrot.slane %v2541_v10, %v3750_v46 }
 0x4b7   :  { %v2556_v29 = vcombine.low %v2532_v15, %v2548_v17  ;;  %v2557_v32 = vcombine.high %v2532_v15, %v2548_v17  ;;  %v2572_v37 = vcombine.low %v2539_v16, %v2555_v19  ;;  %v2573_v59 = vcombine.high %v2539_v16, %v2555_v19 }
 0x4b9   :  { %v2564_v22 = vrot.slane %v2556_v29, %v3756_v56  ;;  %v2571_v50 = vrot.slane %v2557_v32, %v3756_v56  ;;  %v2580_v24 = vrot.slane %v2572_v37, %v3756_v56  ;;  %v2587_v13 = vrot.slane %v2573_v59, %v3756_v56  ;;  %v2893_v59 = vld [vmem:[%s4214_s5] sm:$0xff] }
 0x4bb   :  { %v2660_v20 = vcombine.low %v2564_v22, %v2571_v50  ;;  %v3188_v23 = vcombine.high %v2564_v22, %v2571_v50  ;;  %v2676_v25 = vcombine.low %v2580_v24, %v2587_v13  ;;  %v3189_v26 = vcombine.high %v2580_v24, %v2587_v13  ;;  %v2896_v50 = vld [vmem:[%s4214_s5 + $0x18] sm:$0xff]  ;;  %v2985_v13 = vld [vmem:[%s4215_s6] sm:$0xff] }
 0x4bc   :  { %v3483_v22 = vpack.c.bf16 %v2894_v18, %v2893_v59  ;;  %v3487_v24 = vpack.c.bf16 %v2896_v50, %v2895_v21 }
 0x4bd   :  { %v2667_v34 = vrot.slane %v2660_v20, %v3750_v46  ;;  %v2675_v27 = vrot.slane %v3188_v23, %v3750_v46  ;;  %v2683_v35 = vrot.slane %v2676_v25, %v3750_v46  ;;  %v2691_v36 = vrot.slane %v3189_v26, %v3750_v46  ;;  %v2987_v20 = vld [vmem:[%s4215_s6 + $0x10] sm:$0xff]  ;;  %v2988_v25 = vld [vmem:[%s4215_s6 + $0x18] sm:$0xff] }
 0x4be   :  { %3484 = vmatprep.subr.bf16.mxu1 %v3483_v22  ;;  %v3491_v23 = vpack.c.bf16 %v2986_v12, %v2985_v13  ;;  %v3495_v26 = vpack.c.bf16 %v2988_v25, %v2987_v20 }
 0x4bf   :  { %v2692_v39 = vcombine.low %v2667_v34, %v2675_v27  ;;  %v2708_v40 = vcombine.low %v2683_v35, %v2691_v36  ;;  %v2693_v28 = vcombine.high %v2667_v34, %v2675_v27  ;;  %v2709_v41 = vcombine.high %v2683_v35, %v2691_v36  ;;  %3486 = vmatpush3.bf16.msra.mxu1 %v3483_v22  ;;  %v2991_v27 = vld [vmem:[%s4215_s6 + $0x30] sm:$0xff]  ;;  %v2992_v35 = vld [vmem:[%s4215_s6 + $0x38] sm:$0xff] }
 0x4c0   :  { %3488 = vmatprep.subr.bf16.mxu1 %v3487_v24  ;;  %3492 = vmatprep.subr.bf16.mxu0 %v3491_v23  ;;  %v3499_v34 = vpack.c.bf16 %v2990_v33, %v2989_v30  ;;  %v3503_v36 = vpack.c.bf16 %v2992_v35, %v2991_v27  ;;  %v3199_v27 = vld [vmem:[%s4216_s7 + $0x7] ss:$0 sm:$0xff] }
 0x4c1   :  { %v2700_v49 = vrot.slane %v2692_v39, %v3756_v56  ;;  %v2716_v42 = vrot.slane %v2708_v40, %v3756_v56  ;;  %v2707_v43 = vrot.slane %v2693_v28, %v3756_v56  ;;  %v2723_v45 = vrot.slane %v2709_v41, %v3756_v56  ;;  %v2994_v39 = vld [vmem:[%s4215_s6 + $0x48] sm:$0xff]  ;;  %v2995_v28 = vld [vmem:[%s4215_s6 + $0x50] sm:$0xff]  ;;  %v2996_v41 = vld [vmem:[%s4215_s6 + $0x58] sm:$0xff] }
 0x4c2   :  { %v3507_v40 = vpack.c.bf16 %v2994_v39, %v2993_v38  ;;  %v3200_v39 = vld [vmem:[%s4216_s7 + $0x8] ss:$0 sm:$0xff] }
 0x4c3   :  { %v2725_v47 = vcombine.high %v2700_v49, %v2716_v42  ;;  %v2726_v48 = vcombine.low %v2707_v43, %v2723_v45  ;;  %v2727_v44 = vcombine.high %v2707_v43, %v2723_v45  ;;  %v2724_v46 = vcombine.low %v2700_v49, %v2716_v42  ;;  %3490 = vmatpush3.bf16.msra.mxu1 %v3487_v24  ;;  %v2997_v42 = vld [vmem:[%s4215_s6 + $0x60] sm:$0xff]  ;;  %v2998_v43 = vld [vmem:[%s4215_s6 + $0x68] sm:$0xff] }
 0x4c4   :  { %v3511_v49 = vpack.c.bf16 %v2996_v41, %v2995_v28  ;;  %v3515_v45 = vpack.c.bf16 %v2998_v43, %v2997_v42 }
 0x4c5   :  { %2732 = vrot.lane.b32.xlu1 %v2725_v47, %s3608_s17 }
 0x4c9   :  { %2740 = vrot.lane.b32.xlu1 %v2726_v48, %s3609_s18 }
 0x4cd   :  { %2748 = vrot.lane.b32.xlu1 %v2727_v44, %s3610_s1 }
 0x4f2   :  { %v2731_v51 = vpop.permute.xlu0 %2730 }
 0x4f3   :  { %v2752_v56 = vsel %vm1167_vm2, %v2656_v2, %v2731_v51 }
 0x4f6   :  { %v2739_v52 = vpop.permute.xlu0 %2738 }
 0x4f7   :  { %v2755_v53 = vsel %vm2754_vm3, %v2752_v56, %v2739_v52 }
 0x4fa   :  { %v2747_v31 = vpop.permute.xlu0 %2746 }
 0x4fb   :  { %v2758_v60 = vsel %vm2757_vm4, %v2755_v53, %v2747_v31  ;;  %v3193_v53 = vld [vmem:[%s4216_s7 + $0x5] ss:$0 sm:$0xff] }
 0x4fc   :  { %3402 = vmatprep.mubr.msk.f32.mxu0 %vm41_vm0, %v2758_v60  ;;  %v3194_v60 = vld [vmem:[%s4216_s7 + $0x6] ss:$0 sm:$0xff] }
 0x537   :  { %v2733_v63 = vpop.permute.xlu1 %2732 }
 0x538   :  { %v2753_v54 = vsel %vm1167_vm2, %v2724_v46, %v2733_v63 }
 0x53b   :  { %v2741_v0 = vpop.permute.xlu1 %2740 }
 0x53c   :  { %v2756_v55 = vsel %vm2754_vm3, %v2753_v54, %v2741_v0 }
 0x53f   :  { %v2749_v1 = vpop.permute.xlu1 %2748 }
 0x540   :  { %v2759_v3 = vsel %vm2757_vm4, %v2756_v55, %v2749_v1 }
 0x541   :  { %3403 = vmatmul.mubr.msk.f32.vlgmr.msra.gmra.mrb[14].mxu0 %vm41_vm0, %v2759_v3 }
 0x542   :  { %3494 = vmatpush3.bf16.msra.mxu0 %v3491_v23 }
 0x543   :  { %3496 = vmatprep.subr.bf16.mxu0 %v3495_v26 }
 0x546   :  { %3498 = vmatpush3.bf16.msra.mxu0 %v3495_v26 }
 0x547   :  { %3500 = vmatprep.subr.bf16.mxu0 %v3499_v34 }
 0x54a   :  { %3502 = vmatpush3.bf16.msra.mxu0 %v3499_v34 }
 0x54b   :  { %3504 = vmatprep.subr.bf16.mxu0 %v3503_v36 }
 0x54e   :  { %3506 = vmatpush3.bf16.msra.mxu0 %v3503_v36 }
 0x54f   :  { %3508 = vmatprep.subr.bf16.mxu0 %v3507_v40 }
 0x552   :  { %3510 = vmatpush3.bf16.msra.mxu0 %v3507_v40 }
 0x553   :  { %3512 = vmatprep.subr.bf16.mxu0 %v3511_v49 }
 0x556   :  { %3514 = vmatpush3.bf16.msra.mxu0 %v3511_v49 }
 0x557   :  { %3516 = vmatprep.subr.bf16.mxu0 %v3515_v45 }
 0x55a   :  { %3518 = vmatpush3.bf16.msra.mxu0 %v3515_v45 }
 0x614   :  { %v3404_v62 = vpop.f32.mrb[14].mxu0 }
 0x615   :  { %v2847_v2 = vadd.f32 %v3404_v62, %v3190_v61  ;;  %v2841_v57 = vpop.f32.mrb[15].mxu0  ;;  %v3000_v62 = vld [vmem:[%s4215_s6 + $0x78] sm:$0xff] }
 0x616   :  { %v2842_v58 = vadd.f32 %v3190_v61, %v2841_v57  ;;  %v2999_v61 = vld [vmem:[%s4215_s6 + $0x70] sm:$0xff]  ;;  %v3195_v57 = vld [vmem:[%s4216_s7 + $0x9] ss:$0 sm:$0xff] }
 0x617   :  { %v2851_v5 = vadd.f32 %v3575_v4, %v2847_v2  ;;  %v3519_v2 = vpack.c.bf16 %v3000_v62, %v2999_v61 }
 0x618   :  { %v2850_v7 = vadd.f32 %v3576_v6, %v2842_v58 }
 0x619   :  { %v2857_v8 = vsel %vm41_vm0, %v2851_v5, 0.0  ;;  %3520 = vmatprep.subr.bf16.mxu0 %v3519_v2 }
 0x61a   :  { %2858 = vadd.xlane.f32.xlu1 %v2857_v8  ;;  %v2854_v9 = vsel %vm41_vm0, %v2850_v7, 0.0  ;;  %3522 = vmatpush3.bf16.msra.mxu0 %v3519_v2 }
 0x61b   :  { %2855 = vadd.xlane.f32.xlu0 %v2854_v9  ;;  %v3198_v9 = vld [vmem:[%s4216_s7 + $0x4] ss:$0 sm:$0xff] }
 0x6a7   :  { %v2859_v10 = vpop.xlane.xlu1 %2858 }
 0x6a8   :  { %v2862_v11 = vmul.f32 0.03125, %v2859_v10  ;;  %v2856_v14 = vpop.xlane.xlu0 %2855 }
 0x6a9   :  { %v2861_v15 = vmul.f32 0.03125, %v2856_v14 }
 0x6aa   :  { %v4103_v16 = vsub.f32 %v2851_v5, %v2862_v11 }
 0x6ab   :  { %v2863_v17 = vsub.f32 %v2850_v7, %v2861_v15 }
 0x6ac   :  { %v2866_v32 = vmul.f32 %v4103_v16, %v4103_v16 }
 0x6ad   :  { %v2865_v19 = vmul.f32 %v2863_v17, %v2863_v17 }
 0x6ae   :  { %v2870_v37 = vsel %vm41_vm0, %v2866_v32, 0.0 }
 0x6af   :  { %v2867_v29 = vsel %vm41_vm0, %v2865_v19, 0.0 }
 0x6b0   :  { %2868 = vadd.xlane.f32.xlu0 %v2867_v29 }
 0x6b4   :  { %2871 = vadd.xlane.f32.xlu0 %v2870_v37 }
 0x73d   :  { %v2869_v47 = vpop.xlane.xlu0 %2868 }
 0x73e   :  { %v2873_v48 = vmul.f32 0.03125, %v2869_v47 }
 0x740   :  { %v2875_v44 = vadd.f32 1e-05, %v2873_v48 }
 0x741   :  { %v2872_v46 = vpop.xlane.xlu0 %2871 }
 0x742   :  { %3567 = vrsqrt.f32 %v2875_v44  ;;  %v2874_v51 = vmul.f32 0.03125, %v2872_v46 }
 0x744   :  { %v2876_v52 = vadd.f32 1e-05, %v2874_v51 }
 0x746   :  { %3569 = vrsqrt.f32 %v2876_v52 }
 0x74c   :  { %v3568_v56 = vpop.eup %3567 }
 0x74d   :  { %v2879_v31 = vmul.f32 %v3568_v56, %v2863_v17 }
 0x74f   :  { %v2885_v63 = vmul.f32 %v3193_v53, %v2879_v31 }
 0x750   :  { %v3570_v0 = vpop.eup %3569 }
 0x751   :  { %v2880_v54 = vmul.f32 %v3570_v0, %v4103_v16  ;;  %v2891_v55 = vadd.f32 %v3194_v60, %v2885_v63 }
 0x753   :  { %v2886_v1 = vmul.f32 %v3193_v53, %v2880_v54  ;;  %3413 = vmatprep.mubr.msk.f32.mxu1 %vm41_vm0, %v2891_v55 }
 0x755   :  { %v2892_v3 = vadd.f32 %v3194_v60, %v2886_v1 }
 0x757   :  { %3414 = vmatmul.mubr.msk.f32.vlgmr.msra.gmra.mrb[24].mxu1 %vm41_vm0, %v2892_v3 }
 0x82a   :  { %v3415_v58 = vpop.f32.mrb[24].mxu1 }
 0x82b   :  { %v2980_v4 = vadd.f32 %v3415_v58, %v3195_v57  ;;  %v2974_v5 = vpop.f32.mrb[25].mxu1 }
 0x82c   :  { %v2975_v6 = vadd.f32 %v3195_v57, %v2974_v5 }
 0x82d   :  { %v2984_v8 = vmax.f32 %v2980_v4, 0.0 }
 0x82e   :  { %v2983_v7 = vmax.f32 %v2975_v6, 0.0 }
 0x830   :  { %3448 = vmatprep.mubr.f32.mxu0 %v2983_v7 }
 0x831   :  { %3449 = vmatmul.mubr.f32.vlgmr.msra.gmra.mrb[16].mxu0 %v2984_v8 }
 0x904   :  { %v3450_v10 = vpop.f32.mrb[16].mxu0 }
 0x905   :  { %v3078_v11 = vadd.f32 %v3450_v10, %v3198_v9  ;;  %v3072_v14 = vpop.f32.mrb[17].mxu0 }
 0x906   :  { %v3073_v15 = vadd.f32 %v3198_v9, %v3072_v14 }
 0x907   :  { %v3082_v16 = vadd.f32 %v3078_v11, %v2892_v3 }
 0x908   :  { %v3081_v17 = vadd.f32 %v3073_v15, %v2891_v55 }
 0x909   :  { %v3088_v19 = vsel %vm41_vm0, %v3082_v16, 0.0 }
 0x90a   :  { %3089 = vadd.xlane.f32.xlu0 %v3088_v19  ;;  %v3085_v29 = vsel %vm41_vm0, %v3081_v17, 0.0 }
 0x90b   :  { %3086 = vadd.xlane.f32.xlu1 %v3085_v29 }
 0x997   :  { %v3090_v32 = vpop.xlane.xlu0 %3089 }
 0x998   :  { %v3092_v37 = vmul.f32 0.03125, %v3090_v32  ;;  %v3087_v59 = vpop.xlane.xlu1 %3086 }
 0x999   :  { %v3091_v18 = vmul.f32 0.03125, %v3087_v59 }
 0x99a   :  { %v3094_v21 = vsub.f32 %v3082_v16, %v3092_v37 }
 0x99b   :  { %v3093_v22 = vsub.f32 %v3081_v17, %v3091_v18 }
 0x99c   :  { %v3096_v50 = vmul.f32 %v3094_v21, %v3094_v21 }
 0x99d   :  { %v3095_v24 = vmul.f32 %v3093_v22, %v3093_v22 }
 0x99e   :  { %v3100_v13 = vsel %vm41_vm0, %v3096_v50, 0.0 }
 0x99f   :  { %3101 = vadd.xlane.f32.xlu0 %v3100_v13  ;;  %v3097_v12 = vsel %vm41_vm0, %v3095_v24, 0.0 }
 0x9a0   :  { %3098 = vadd.xlane.f32.xlu1 %v3097_v12 }
 0xa2c   :  { %v3102_v20 = vpop.xlane.xlu0 %3101 }
 0xa2d   :  { %v3104_v23 = vmul.f32 0.03125, %v3102_v20  ;;  %v3099_v25 = vpop.xlane.xlu1 %3098 }
 0xa2e   :  { %v3103_v26 = vmul.f32 0.03125, %v3099_v25 }
 0xa2f   :  { %v3106_v30 = vadd.f32 1e-05, %v3104_v23 }
 0xa30   :  { %v3105_v33 = vadd.f32 1e-05, %v3103_v26 }
 0xa31   :  { %3571 = vrsqrt.f32 %v3106_v30 }
 0xa32   :  { %3573 = vrsqrt.f32 %v3105_v33 }
 0xa3b   :  { %v3572_v34 = vpop.eup %3571 }
 0xa3c   :  { %v3574_v35 = vpop.eup %3573  ;;  %v3110_v36 = vmul.f32 %v3572_v34, %v3094_v21 }
 0xa3d   :  { %v3109_v38 = vmul.f32 %v3574_v35, %v3093_v22 }
 0xa3e   :  { %v3116_v40 = vmul.f32 %v3199_v27, %v3110_v36 }
 0xa3f   :  { %v3115_v28 = vmul.f32 %v3199_v27, %v3109_v38 }
 0xa40   :  { %v3122_v41 = vadd.f32 %v3200_v39, %v3116_v40 }
 0xa41   :  { %v3121_v49 = vadd.f32 %v3200_v39, %v3115_v28 }
 0xa42   :  { %3124 = vst.msk [vmem:[#allocation2 + $0x8] sm:$0xff] %vm41_vm0, %v3122_v41 }
 0xa43   :  { %3123 = vst.msk [vmem:[#allocation2] sm:$0xff] %vm41_vm0, %v3121_v49 }
 0xa44   :  { %3588 = shalt.err (!%p3585_p4)
}
 0xa45   :  { %s3589_s9 = scalar_lea.hbm %s4217_s8, 256 }
 0xa46   :  { %p3590_p5 = scmp.ne.s32.totalorder %s4217_s8, %s3589_s9  ;;  %p3593_p6 = scmp.lt.u32.totalorder %s3589_s9, %s4217_s8 }
 0xa48   :  { %p3595_p7 = pnand %p3593_p6, %p3590_p5 }
 0xa4a   :  { %3598 = shalt.err (!%p3595_p7)
}
 0xa4b   :  { %s3612_s13 = smov 128  }
 0xa4c   :  { %3136 = dma.vmem_to_hbm [thread:$0]  %s3131_s29, 256, %s4217_s8, [#allocation3], %s3612_s13, %s3612_s13, %s3608_s17  }
 0xa4d   :  { %3599 = dma.done.wait [#allocation3], 256  }
 0xa4e   :  { %3600 = vsyncadd [#allocation3], 4294967040 }
 0xa4f   :  { %3140 = vsyncpa [#allocation3], 1 }

</bundles_post_ra>
